<compile_context>
chip_gen: v6e
topology: v6e:2x2x1
jax: 0.10.0
libtpu: 0.0.40
codegen_flags: <defaults>
</compile_context>

<pallas_src>
import functools
import itertools

import numpy as np
import jax
import jax.numpy as jnp
from jax.experimental import pallas as pl
from jax.experimental.pallas import tpu as pltpu


def _round_up(n, m):
    return ((n + m - 1) // m) * m


def _trn_fused_kernel(x_ref, sel_ref, w1_ref, b1_ref, w2_ref, b2_ref,
                      msum_ref, rowscale_ref, blockid_ref, o_ref,
                      *, n_frames, rows_pad):
    """Entire multi-scale TRN head in one invocation.

    x_ref        : (B*T, D)          f32  raw frame features
    sel_ref      : (T*rows_pad, B*T) f32  0/1 gather matrix (per-call, host built)
    w1_ref       : (T*D, S*H)        bf16 per-scale layer-1 weights, hstacked
    b1_ref       : (1, S*H)          f32
    w2_ref       : (S*H, C_pad)      bf16 per-scale layer-2 weights, vstacked
    b2_ref       : (1, C_pad)        f32  = sum_s count_s * b2[s]
    msum_ref     : (B_pad, rows_pad) f32  row -> batch summation matrix
    rowscale_ref : (rows_pad, 1)     i32  scale id per relation row (-1 for pad rows)
    blockid_ref  : (1, S*H)          i32  scale id per hidden column
    o_ref        : (B_pad, C_pad)    f32  lane-dense output tile
    """
    # First ReLU on the raw features (commutes with the 0/1 gather; relu(0)=0).
    xr = jnp.maximum(x_ref[...], 0.0)                                      # (B*T, D)

    # Exact gather of every (relation, frame-slot, batch) row: one f32 MXU matmul.
    g = jnp.dot(sel_ref[...], xr, preferred_element_type=jnp.float32)     # (T*rows, D)
    # Lay the T frame slots out along lanes -> relation feature rows (rows, T*D).
    x_rel = jnp.concatenate(
        [g[t * rows_pad:(t + 1) * rows_pad, :] for t in range(n_frames)], axis=-1)

    # Layer 1 for all scales at once (bf16 MXU, f32 accumulation).
    h = jnp.dot(x_rel.astype(jnp.bfloat16), w1_ref[...],
                preferred_element_type=jnp.float32)                       # (rows, S*H)
    h = jnp.maximum(h + b1_ref[...], 0.0)                                 # bias+ReLU f32

    # Keep only each row's own scale block.  Off-scale blocks are garbage by
    # construction, and padded rows (rowscale = -1) match no block, so the
    # relu(b1) contribution of pad rows can never leak into the result.
    keep = blockid_ref[...] == rowscale_ref[...]                          # (rows, S*H)
    h = jnp.where(keep, h, 0.0)

    # Sum relations per batch element BEFORE layer 2 (exact f32 matmul, M -> B_pad).
    hsum = jnp.dot(msum_ref[...], h, preferred_element_type=jnp.float32)  # (B_pad, S*H)

    # Layer 2 for all scales at once + folded bias constant; dense (8,128) store.
    out = jnp.dot(hsum.astype(jnp.bfloat16), w2_ref[...],
                  preferred_element_type=jnp.float32) + b2_ref[...]
    o_ref[...] = out


@functools.partial(jax.jit, static_argnames="num_class")
def _trn_forward(x, sel, w1, b1, w2, b2c, msum, rowscale, blockid, *, num_class):
    B, T, D = x.shape
    rows_pad = sel.shape[0] // T
    b_pad, c_pad = msum.shape[0], w2.shape[1]
    x2d = x.reshape(B * T, D)                       # bitcast reshape, no data movement
    kern = functools.partial(_trn_fused_kernel, n_frames=T, rows_pad=rows_pad)
    vmem = pl.BlockSpec(memory_space=pltpu.MemorySpace.VMEM)
    out = pl.pallas_call(
        kern,
        out_shape=jax.ShapeDtypeStruct((b_pad, c_pad), jnp.float32),
        in_specs=[vmem] * 9,
        out_specs=vmem,
    )(x2d, sel, w1, b1, w2, b2c, msum, rowscale, blockid)
    return out[:B, :num_class]


class RelationModuleMultiScalePallas:
    """Forward-equivalent of the PyTorch RelationModuleMultiScale (bf16 matmuls)."""

    def __init__(self, img_feature_dim, num_frames, num_class, key, seed=0):
        self.subsample_num = 3
        self.img_feature_dim = img_feature_dim
        self.num_frames = num_frames
        self.num_class = num_class
        self.num_bottleneck = 256

        self.scales = list(range(num_frames, 1, -1))
        self.relations_scales = []
        self.subsample_scales = []
        for scale in self.scales:
            rels = list(itertools.combinations(range(num_frames), scale))
            self.relations_scales.append(rels)
            self.subsample_scales.append(min(self.subsample_num, len(rels)))

        S = len(self.scales)
        D, T, H, C = img_feature_dim, num_frames, self.num_bottleneck, num_class
        P = T * D
        self.c_pad = _round_up(max(C, 128), 128)    # lane-dense class dimension

        # ---- per-scale fp32 parameters (kept for the pure-JAX references) ----
        self.w1_f32, self.b1_f32, self.w2_f32, self.b2_f32 = [], [], [], []
        for sid, scale in enumerate(self.scales):
            key, k1, k2, k3, k4 = jax.random.split(key, 5)
            in_dim = scale * D
            self.w1_f32.append(np.asarray(jax.random.normal(k1, (in_dim, H)),
                                          np.float32) / np.sqrt(np.float32(in_dim)))
            self.b1_f32.append(0.01 * np.asarray(jax.random.normal(k2, (H,)), np.float32))
            self.w2_f32.append(np.asarray(jax.random.normal(k3, (H, C)),
                                          np.float32) / np.sqrt(np.float32(H)))
            self.b2_f32.append(0.01 * np.asarray(jax.random.normal(k4, (C,)), np.float32))

        # ---- fused / padded parameters for the kernel ----
        w1_wide = np.zeros((P, S * H), np.float32)         # hstack over scales
        b1_wide = np.zeros((1, S * H), np.float32)
        w2_tall = np.zeros((S * H, self.c_pad), np.float32)  # vstack over scales
        b2_fold = np.zeros((1, self.c_pad), np.float32)      # sum_s count_s * b2[s]
        for sid, scale in enumerate(self.scales):
            in_dim = scale * D
            w1_wide[:in_dim, sid * H:(sid + 1) * H] = self.w1_f32[sid]
            b1_wide[0, sid * H:(sid + 1) * H] = self.b1_f32[sid]
            w2_tall[sid * H:(sid + 1) * H, :C] = self.w2_f32[sid]
            b2_fold[0, :C] += self.subsample_scales[sid] * self.b2_f32[sid]
        self.w1_wide = jnp.asarray(w1_wide, jnp.bfloat16)
        self.b1_wide = jnp.asarray(b1_wide, jnp.float32)
        self.w2_tall = jnp.asarray(w2_tall, jnp.bfloat16)
        self.b2_fold = jnp.asarray(b2_fold, jnp.float32)
        self.block_id = jnp.asarray((np.arange(S * H) // H).astype(np.int32)
                                    .reshape(1, S * H))

        # Global relation slot -> scale id (static: 1 relation at scale 0, 3 elsewhere).
        self.rel_scale_id = []
        for sid in range(S):
            self.rel_scale_id += [sid] * self.subsample_scales[sid]
        self.num_rel = len(self.rel_scale_id)

        self._static_cache = {}
        self._rng = np.random.default_rng(seed)     # deterministic stand-in RNG

    # ---- host-side helpers (pure numpy, no XLA launches) ----
    def sample_relations(self):
        """Per-forward relation subsampling (mirrors torch's np.random.choice)."""
        chosen = [[self.relations_scales[0][0]]]
        for sid in range(1, len(self.scales)):
            idx = self._rng.choice(len(self.relations_scales[sid]),
                                   self.subsample_scales[sid], replace=False)
            chosen.append([self.relations_scales[sid][int(i)] for i in idx])
        return chosen

    def _static_tables(self, batch):
        if batch in self._static_cache:
            return self._static_cache[batch]
        rows_pad = _round_up(self.num_rel * batch, 8)
        b_pad = _round_up(batch, 8)
        msum = np.zeros((b_pad, rows_pad), np.float32)
        rowscale = np.full((rows_pad, 1), -1, np.int32)   # -1 marks padded rows
        for rid, sid in enumerate(self.rel_scale_id):
            for b in range(batch):
                row = rid * batch + b
                msum[b, row] = 1.0
                rowscale[row, 0] = sid
        tables = (rows_pad, b_pad, jnp.asarray(msum), jnp.asarray(rowscale))
        self._static_cache[batch] = tables
        return tables

    def build_gather_matrix(self, chosen, batch):
        """0/1 selection matrix driving the in-kernel gather matmul."""
        T = self.num_frames
        rows_pad, _, _, _ = self._static_tables(batch)
        sel = np.zeros((T, rows_pad, batch * T), np.float32)
        rid = 0
        for rels in chosen:
            for rel in rels:
                for slot, f in enumerate(rel):
                    for b in range(batch):
                        sel[slot, rid * batch + b, b * T + int(f)] = 1.0
                rid += 1
        return jnp.asarray(sel.reshape(T * rows_pad, batch * T))

    # ---- forward ----
    def apply(self, x, sel):
        _, _, msum, rowscale = self._static_tables(int(x.shape[0]))
        return _trn_forward(x, sel, self.w1_wide, self.b1_wide, self.w2_tall,
                            self.b2_fold, msum, rowscale, self.block_id,
                            num_class=self.num_class)

    def __call__(self, x):
        chosen = self.sample_relations()
        sel = self.build_gather_matrix(chosen, int(x.shape[0]))
        return self.apply(x, sel)


# ---- pure-JAX references (original algorithm, per-relation MLPs) ----
def _reference_quantized(x, chosen, module):
    """Same bf16-input / f32-accumulate policy as the kernel."""
    B, T, D = x.shape
    out = jnp.zeros((B, module.num_class), jnp.float32)
    for sid, rels in enumerate(chosen):
        scale = module.scales[sid]
        w1 = jnp.asarray(module.w1_f32[sid], jnp.bfloat16)
        b1 = jnp.asarray(module.b1_f32[sid], jnp.float32)
        w2 = jnp.asarray(module.w2_f32[sid], jnp.bfloat16)
        b2 = jnp.asarray(module.b2_f32[sid], jnp.float32)
        for rel in rels:
            a = jnp.maximum(x[:, jnp.asarray(rel), :].reshape(B, scale * D), 0.0)
            h = jnp.dot(a.astype(jnp.bfloat16), w1,
                        preferred_element_type=jnp.float32) + b1
            h = jnp.maximum(h, 0.0)
            out = out + jnp.dot(h.astype(jnp.bfloat16), w2,
                                preferred_element_type=jnp.float32) + b2
    return out


def _reference_fp32(x, chosen, module):
    """Full-precision reference (matches the PyTorch module's math)."""
    B, T, D = x.shape
    out = jnp.zeros((B, module.num_class), jnp.float32)
    for sid, rels in enumerate(chosen):
        scale = module.scales[sid]
        w1 = jnp.asarray(module.w1_f32[sid]); b1 = jnp.asarray(module.b1_f32[sid])
        w2 = jnp.asarray(module.w2_f32[sid]); b2 = jnp.asarray(module.b2_f32[sid])
        for rel in rels:
            a = jnp.maximum(x[:, jnp.asarray(rel), :].reshape(B, scale * D), 0.0)
            h = jnp.maximum(a @ w1 + b1, 0.0)
            out = out + (h @ w2 + b2)
    return out


if __name__ == "__main__":
    # Small, module-consistent shapes: batch=2, num_frames=8, img_feature_dim=32, 16 classes.
    B, T, D, C = 2, 8, 32, 16
    key = jax.random.PRNGKey(0)
    key, pkey, xkey = jax.random.split(key, 3)

    module = RelationModuleMultiScalePallas(img_feature_dim=D, num_frames=T,
                                            num_class=C, key=pkey)
    x = jax.random.normal(xkey, (B, T, D), dtype=jnp.float32)

    chosen = module.sample_relations()
    sel = module.build_gather_matrix(chosen, B)
    out = jax.block_until_ready(module.apply(x, sel))
    assert out.shape == (B, C), out.shape
    assert bool(jnp.all(jnp.isfinite(out)))

    # Identically-quantized reference (tight) and fp32 reference (loose, bounds bf16 error).
    ref_q = _reference_quantized(x, chosen, module)
    assert jnp.allclose(out, ref_q, rtol=5e-2, atol=1e-1), \
        float(jnp.max(jnp.abs(out - ref_q)))
    ref_f = _reference_fp32(x, chosen, module)
    assert jnp.allclose(out, ref_f, rtol=1e-1, atol=5e-1), \
        float(jnp.max(jnp.abs(out - ref_f)))

    # Second forward: fresh relation sample, same compiled kernel (no retrace).
    out2 = jax.block_until_ready(module(x))
    assert out2.shape == (B, C)

    print("KERNEL_OK")
</pallas_src>

<mosaic_0001>
module attributes {stable_mosaic.version = 11 : i64} {
  func.func @_trn_fused_kernel(%arg0: memref<16x32xf32, #tpu.memory_space<vmem>>, %arg1: memref<320x16xf32, #tpu.memory_space<vmem>>, %arg2: memref<256x1792xbf16, #tpu.memory_space<vmem>>, %arg3: memref<1x1792xf32, #tpu.memory_space<vmem>>, %arg4: memref<1792x128xbf16, #tpu.memory_space<vmem>>, %arg5: memref<1x128xf32, #tpu.memory_space<vmem>>, %arg6: memref<8x40xf32, #tpu.memory_space<vmem>>, %arg7: memref<40x1xi32, #tpu.memory_space<vmem>>, %arg8: memref<1x1792xi32, #tpu.memory_space<vmem>>, %arg9: memref<8x128xf32, #tpu.memory_space<vmem>>) attributes {dimension_semantics = [], scalar_prefetch = 0 : i64, scratch_operands = 0 : i64, tpu.core_type = #tpu.core_type<tc>} {
    %c0 = arith.constant 0 : index
    %c0_0 = arith.constant 0 : index
    %0 = vector.load %arg0[%c0, %c0_0] : memref<16x32xf32, #tpu.memory_space<vmem>>, vector<16x32xf32>
    %cst = arith.constant 0.000000e+00 : f32
    %1 = vector.broadcast %cst : f32 to vector<16x32xf32>
    %2 = arith.maximumf %0, %1 : vector<16x32xf32>
    %c0_1 = arith.constant 0 : index
    %c0_2 = arith.constant 0 : index
    %3 = vector.load %arg1[%c0_1, %c0_2] : memref<320x16xf32, #tpu.memory_space<vmem>>, vector<320x16xf32>
    %cst_3 = arith.constant dense<0.000000e+00> : vector<320x32xf32>
    %4 = tpu.matmul %3, %2, %cst_3 {dimension_numbers = #tpu.dot_dimension_numbers<[1], [0], [0], [1], [0, 0, 1, 1], [], []>} : vector<320x16xf32>, vector<16x32xf32>, vector<320x32xf32> -> vector<320x32xf32>
    %5 = vector.extract_strided_slice %4 {offsets = [0, 0], sizes = [40, 32], strides = [1, 1]} : vector<320x32xf32> to vector<40x32xf32>
    %6 = vector.extract_strided_slice %4 {offsets = [40, 0], sizes = [40, 32], strides = [1, 1]} : vector<320x32xf32> to vector<40x32xf32>
    %7 = vector.extract_strided_slice %4 {offsets = [80, 0], sizes = [40, 32], strides = [1, 1]} : vector<320x32xf32> to vector<40x32xf32>
    %8 = vector.extract_strided_slice %4 {offsets = [120, 0], sizes = [40, 32], strides = [1, 1]} : vector<320x32xf32> to vector<40x32xf32>
    %9 = vector.extract_strided_slice %4 {offsets = [160, 0], sizes = [40, 32], strides = [1, 1]} : vector<320x32xf32> to vector<40x32xf32>
    %10 = vector.extract_strided_slice %4 {offsets = [200, 0], sizes = [40, 32], strides = [1, 1]} : vector<320x32xf32> to vector<40x32xf32>
    %11 = vector.extract_strided_slice %4 {offsets = [240, 0], sizes = [40, 32], strides = [1, 1]} : vector<320x32xf32> to vector<40x32xf32>
    %12 = vector.extract_strided_slice %4 {offsets = [280, 0], sizes = [40, 32], strides = [1, 1]} : vector<320x32xf32> to vector<40x32xf32>
    %13 = tpu.concatenate %5, %6, %7, %8, %9, %10, %11, %12 in 1 : vector<40x32xf32>, vector<40x32xf32>, vector<40x32xf32>, vector<40x32xf32>, vector<40x32xf32>, vector<40x32xf32>, vector<40x32xf32>, vector<40x32xf32> -> vector<40x256xf32>
    %14 = arith.truncf %13 : vector<40x256xf32> to vector<40x256xbf16>
    %c0_4 = arith.constant 0 : index
    %c0_5 = arith.constant 0 : index
    %15 = vector.load %arg2[%c0_4, %c0_5] : memref<256x1792xbf16, #tpu.memory_space<vmem>>, vector<256x1792xbf16>
    %cst_6 = arith.constant dense<0.000000e+00> : vector<40x1792xf32>
    %16 = tpu.matmul %14, %15, %cst_6 {dimension_numbers = #tpu.dot_dimension_numbers<[1], [0], [0], [1], [0, 0, 1, 1], [], []>} : vector<40x256xbf16>, vector<256x1792xbf16>, vector<40x1792xf32> -> vector<40x1792xf32>
    %c0_7 = arith.constant 0 : index
    %c0_8 = arith.constant 0 : index
    %17 = vector.load %arg3[%c0_7, %c0_8] : memref<1x1792xf32, #tpu.memory_space<vmem>>, vector<1x1792xf32>
    %18 = vector.broadcast %17 : vector<1x1792xf32> to vector<40x1792xf32>
    %19 = arith.addf %16, %18 : vector<40x1792xf32>
    %cst_9 = arith.constant 0.000000e+00 : f32
    %20 = vector.broadcast %cst_9 : f32 to vector<40x1792xf32>
    %21 = arith.maximumf %19, %20 : vector<40x1792xf32>
    %c0_10 = arith.constant 0 : index
    %c0_11 = arith.constant 0 : index
    %22 = vector.load %arg8[%c0_10, %c0_11] : memref<1x1792xi32, #tpu.memory_space<vmem>>, vector<1x1792xi32>
    %c0_12 = arith.constant 0 : index
    %c0_13 = arith.constant 0 : index
    %23 = vector.load %arg7[%c0_12, %c0_13] : memref<40x1xi32, #tpu.memory_space<vmem>>, vector<40x1xi32>
    %24 = vector.broadcast %22 : vector<1x1792xi32> to vector<40x1792xi32>
    %25 = vector.broadcast %23 : vector<40x1xi32> to vector<40x1792xi32>
    %26 = arith.cmpi eq, %24, %25 : vector<40x1792xi32>
    %cst_14 = arith.constant 0.000000e+00 : f32
    %27 = vector.broadcast %cst_14 : f32 to vector<40x1792xf32>
    %28 = arith.select %26, %21, %27 : vector<40x1792xi1>, vector<40x1792xf32>
    %c0_15 = arith.constant 0 : index
    %c0_16 = arith.constant 0 : index
    %29 = vector.load %arg6[%c0_15, %c0_16] : memref<8x40xf32, #tpu.memory_space<vmem>>, vector<8x40xf32>
    %cst_17 = arith.constant dense<0.000000e+00> : vector<8x1792xf32>
    %30 = tpu.matmul %29, %28, %cst_17 {dimension_numbers = #tpu.dot_dimension_numbers<[1], [0], [0], [1], [0, 0, 1, 1], [], []>} : vector<8x40xf32>, vector<40x1792xf32>, vector<8x1792xf32> -> vector<8x1792xf32>
    %31 = arith.truncf %30 : vector<8x1792xf32> to vector<8x1792xbf16>
    %c0_18 = arith.constant 0 : index
    %c0_19 = arith.constant 0 : index
    %32 = vector.load %arg4[%c0_18, %c0_19] : memref<1792x128xbf16, #tpu.memory_space<vmem>>, vector<1792x128xbf16>
    %cst_20 = arith.constant dense<0.000000e+00> : vector<8x128xf32>
    %33 = tpu.matmul %31, %32, %cst_20 {dimension_numbers = #tpu.dot_dimension_numbers<[1], [0], [0], [1], [0, 0, 1, 1], [], []>} : vector<8x1792xbf16>, vector<1792x128xbf16>, vector<8x128xf32> -> vector<8x128xf32>
    %c0_21 = arith.constant 0 : index
    %c0_22 = arith.constant 0 : index
    %34 = vector.load %arg5[%c0_21, %c0_22] : memref<1x128xf32, #tpu.memory_space<vmem>>, vector<1x128xf32>
    %35 = vector.broadcast %34 : vector<1x128xf32> to vector<8x128xf32>
    %36 = arith.addf %33, %35 : vector<8x128xf32>
    %c0_23 = arith.constant 0 : index
    %c0_24 = arith.constant 0 : index
    %37 = vector.load %arg9[%c0_23, %c0_24] : memref<8x128xf32, #tpu.memory_space<vmem>>, vector<8x128xf32>
    tpu.vector_store %arg9[%c0_23, %c0_24], %36 {strides = array<i32>} : memref<8x128xf32, #tpu.memory_space<vmem>>, vector<8x128xf32>,
    return
  }
}

</mosaic_0001>

<bundles_post_ra>
// kernel: _trn_forward.1
= control target key start
LH: loop header
LB: loop body
LE: loop exit
PB: predicated region body
PF: predicated region fallthrough
CT: control target
= control target key end

     0   :  { %14 = vsyncpa [#allocation3], 0  ;;  %s6502_s0 = inlined_call_operand.vmem [shape: f32[16,32], index: 0, kind: input, shape index: {}]   ;;  %s6503_s1 = inlined_call_operand.vmem [shape: f32[320,16], index: 1, kind: input, shape index: {}]   ;;  %s6504_s2 = inlined_call_operand.hbm [shape: bf16[256,1792], index: 2, kind: input, shape index: {}]   ;;  %s6505_s3 = inlined_call_operand.vmem [shape: f32[1,1792], index: 3, kind: input, shape index: {}]   ;;  %s6506_s4 = inlined_call_operand.hbm [shape: bf16[1792,128], index: 4, kind: input, shape index: {}]   ;;  %s6507_s5 = inlined_call_operand.vmem [shape: f32[1,128], index: 5, kind: input, shape index: {}]   ;;  %s6508_s6 = inlined_call_operand.vmem [shape: f32[8,40], index: 6, kind: input, shape index: {}]   ;;  %s6509_s7 = inlined_call_operand.vmem [shape: s32[40,1], index: 7, kind: input, shape index: {}]   ;;  %s6510_s8 = inlined_call_operand.vmem [shape: s32[1,1792], index: 8, kind: input, shape index: {}]   ;;  %s6511_s9 = inlined_call_operand.vmem [shape: f32[8,128], index: 9, kind: output, shape index: {}]  }
   0x1   :  { %15 = vsyncpa [#allocation5], 0  ;;  %s5786_s30 = smov [#allocation2]  }
   0x2   :  { %s25_s10 = sshll.u32 %s5786_s30, 4  ;;  %s26_s10 = int_to_ptr.vmem [resolvable:$true] %s25_s10 }
   0x3   :  { %s5750_s11 = scalar_lea.vmem %s26_s10, 28672  ;;  %p5755_p1 = scmp.lt.s32.totalorder %s26_s10, %s26_s10 }
   0x4   :  { %p5751_p0 = scmp.ne.s32.totalorder %s26_s10, %s5750_s11  ;;  %p5756_p2 = scmp.lt.s32.totalorder %s5750_s11, %s5750_s11 }
   0x6   :  { %p5757_p3 = por %p5756_p2, %p5755_p1 }
   0x8   :  { %p5758_p4 = pnand %p5757_p3, %p5751_p0 }
   0xa   :  { %5761 = shalt.err (!%p5758_p4)
}
   0xb   :  { %s5787_s12 = smov 896   ;;  %s5788_s13 = smov 56  }
   0xc   :  { %31 = dma.hbm_to_vmem [thread:$0]  %s6504_s2, 28672, %s26_s10, [#allocation3], %s5787_s12, %s5787_s12, %s5788_s13  }
   0xd   :  { %s5789_s16 = smov [#allocation4]  }
   0xe   :  { %s39_s17 = sshll.u32 %s5789_s16, 4  ;;  %s40_s17 = int_to_ptr.vmem [resolvable:$true] %s39_s17 }
   0xf   :  { %s5770_s18 = scalar_lea.vmem %s40_s17, 14336  ;;  %p5775_p6 = scmp.lt.s32.totalorder %s40_s17, %s40_s17 }
  0x10   :  { %p5771_p5 = scmp.ne.s32.totalorder %s40_s17, %s5770_s18  ;;  %p5776_p7 = scmp.lt.s32.totalorder %s5770_s18, %s5770_s18 }
  0x12   :  { %p5777_p8 = por %p5776_p7, %p5775_p6 }
  0x14   :  { %p5778_p9 = pnand %p5777_p8, %p5771_p5 }
  0x16   :  { %5781 = shalt.err (!%p5778_p9)
}
  0x17   :  { %s5790_s19 = smov 64   ;;  %s5791_s20 = smov 4  }
  0x18   :  { %45 = dma.hbm_to_vmem [thread:$0]  %s6506_s4, 14336, %s40_s17, [#allocation5], %s5790_s19, %s5790_s19, %s5791_s20  }
  0x19   :  { %5782 = dma.done.wait [#allocation3], 28672  }
  0x1a   :  { %5783 = vsyncadd [#allocation3], 4294938624 }
  0x1b   :  { %5784 = dma.done.wait [#allocation5], 14336  }
  0x1c   :  { %5785 = vsyncadd [#allocation5], 4294952960  ;;  %vm105_vm0 = vcmask 130048   ;;  %v62_v0 = vld [vmem:[%s6502_s0 + $0x8] sm:$0xff]  ;;  %v61_v1 = vld [vmem:[%s6502_s0] sm:$0xff]  ;;  %s5793_s14 = smov 96  }
  0x1d   :  { %v65_v2 = vld [vmem:[%s6503_s1] sm:$0xff]  ;;  %v64_v3 = vmax.f32 %v62_v0, 0.0  ;;  %v63_v4 = vmax.f32 %v61_v1, 0.0  ;;  %v66_v5 = vld [vmem:[%s6503_s1 + $0x8] sm:$0xff]  ;;  %v67_v6 = vld [vmem:[%s6503_s1 + $0x10] sm:$0xff]  ;;  %vm611_vm1 = vcmask 261120  }
  0x1e   :  { %5143 = vmatprep.mubr.msk.f32.mxu0 %vm105_vm0, %v65_v2  ;;  %v97_v7 = vld [vmem:[%s6503_s1 + $0x100] sm:$0xff]  ;;  %v98_v8 = vld [vmem:[%s6503_s1 + $0x108] sm:$0xff]  ;;  %v99_v9 = vld [vmem:[%s6503_s1 + $0x110] sm:$0xff]  ;;  %vm617_vm2 = vcmask 523264   ;;  %vm623_vm3 = vcmask 785408   ;;  %vm2784_vm15 = vcmask 326656  }
  0x1f   :  { %5139 = vmatprep.subr.mxu0 %v64_v3  ;;  %5203 = vmatprep.subr.mxu1 %v64_v3  ;;  %v68_v10 = vld [vmem:[%s6503_s1 + $0x18] sm:$0xff]  ;;  %v69_v11 = vld [vmem:[%s6503_s1 + $0x20] sm:$0xff]  ;;  %v70_v14 = vld [vmem:[%s6503_s1 + $0x28] sm:$0xff] }
  0x20   :  { %5140 = vmatpush3.msra.mxu0 %v64_v3  ;;  %5205 = vmatpush3.msra.mxu1 %v64_v3  ;;  %v100_v12 = vld [vmem:[%s6503_s1 + $0x118] sm:$0xff]  ;;  %v101_v13 = vld [vmem:[%s6503_s1 + $0x120] sm:$0xff]  ;;  %v71_v15 = vld [vmem:[%s6503_s1 + $0x30] sm:$0xff] }
  0x21   :  { %5141 = vmatprep.subr.mxu0 %v63_v4  ;;  %5204 = vmatprep.subr.mxu1 %v63_v4  ;;  %v102_v16 = vld [vmem:[%s6503_s1 + $0x128] sm:$0xff]  ;;  %v103_v17 = vld [vmem:[%s6503_s1 + $0x130] sm:$0xff]  ;;  %v72_v18 = vld [vmem:[%s6503_s1 + $0x38] sm:$0xff] }
  0x22   :  { %5142 = vmatpush3.msra.mxu0 %v63_v4  ;;  %5206 = vmatpush3.msra.mxu1 %v63_v4  ;;  %v73_v19 = vld [vmem:[%s6503_s1 + $0x40] sm:$0xff]  ;;  %v104_v20 = vld [vmem:[%s6503_s1 + $0x138] sm:$0xff]  ;;  %v74_v21 = vld [vmem:[%s6503_s1 + $0x48] sm:$0xff] }
  0x23   :  { %5144 = vmatmul.mubr.msk.f32.vlgmr.msra.gmra.mxu0 %vm105_vm0, %v66_v5  ;;  %5191 = vmatprep.mubr.msk.f32.mxu1 %vm105_vm0, %v97_v7  ;;  %v75_v22 = vld [vmem:[%s6503_s1 + $0x50] sm:$0xff]  ;;  %v76_v23 = vld [vmem:[%s6503_s1 + $0x58] sm:$0xff]  ;;  %v77_v24 = vld [vmem:[%s6503_s1 + $0x60] sm:$0xff] }
  0x24   :  { %5146 = vmatprep.mubr.msk.f32.mxu0 %vm105_vm0, %v67_v6  ;;  %5192 = vmatmul.mubr.msk.f32.vlgmr.msra.gmra.mxu1 %vm105_vm0, %v98_v8  ;;  %v78_v25 = vld [vmem:[%s6503_s1 + $0x68] sm:$0xff]  ;;  %v79_v26 = vld [vmem:[%s6503_s1 + $0x70] sm:$0xff]  ;;  %v80_v27 = vld [vmem:[%s6503_s1 + $0x78] sm:$0xff] }
  0x25   :  { %5194 = vmatprep.mubr.msk.f32.mxu1 %vm105_vm0, %v99_v9  ;;  %v81_v28 = vld [vmem:[%s6503_s1 + $0x80] sm:$0xff]  ;;  %v82_v29 = vld [vmem:[%s6503_s1 + $0x88] sm:$0xff]  ;;  %v83_v30 = vld [vmem:[%s6503_s1 + $0x90] sm:$0xff] }
  0x26   :  { %v84_v31 = vld [vmem:[%s6503_s1 + $0x98] sm:$0xff]  ;;  %v85_v32 = vld [vmem:[%s6503_s1 + $0xa0] sm:$0xff]  ;;  %v86_v33 = vld [vmem:[%s6503_s1 + $0xa8] sm:$0xff] }
  0x27   :  { %5147 = vmatmul.mubr.msk.f32.gmra.mxu0 %vm105_vm0, %v68_v10  ;;  %v87_v34 = vld [vmem:[%s6503_s1 + $0xb0] sm:$0xff]  ;;  %v88_v35 = vld [vmem:[%s6503_s1 + $0xb8] sm:$0xff]  ;;  %v89_v36 = vld [vmem:[%s6503_s1 + $0xc0] sm:$0xff] }
  0x28   :  { %5149 = vmatprep.mubr.msk.f32.mxu0 %vm105_vm0, %v69_v11  ;;  %5195 = vmatmul.mubr.msk.f32.gmra.mxu1 %vm105_vm0, %v100_v12  ;;  %v90_v37 = vld [vmem:[%s6503_s1 + $0xc8] sm:$0xff]  ;;  %v91_v38 = vld [vmem:[%s6503_s1 + $0xd0] sm:$0xff]  ;;  %v92_v39 = vld [vmem:[%s6503_s1 + $0xd8] sm:$0xff] }
  0x29   :  { %5197 = vmatprep.mubr.msk.f32.mxu1 %vm105_vm0, %v101_v13  ;;  %v93_v40 = vld [vmem:[%s6503_s1 + $0xe0] sm:$0xff]  ;;  %v94_v41 = vld [vmem:[%s6503_s1 + $0xe8] sm:$0xff]  ;;  %v95_v42 = vld [vmem:[%s6503_s1 + $0xf0] sm:$0xff] }
  0x2a   :  { %v96_v43 = vld [vmem:[%s6503_s1 + $0xf8] sm:$0xff]  ;;  %v5294_v44 = vld [vmem:[#allocation2 + $0x310] ss:$56 sps:$4 sm:$0xff]   ;;  %v5296_v45 = vld [vmem:[#allocation2 + $0x314] ss:$56 sps:$4 sm:$0xff]   ;;  %s5792_s1 = smov 32  }
  0x2b   :  { %5150 = vmatmul.mubr.msk.f32.gmra.mxu0 %vm105_vm0, %v70_v14  ;;  %v5297_v46 = vld [vmem:[#allocation2 + $0x318] ss:$56 sps:$4 sm:$0xff]   ;;  %v5299_v47 = vld [vmem:[#allocation2 + $0x31c] ss:$56 sps:$4 sm:$0xff]   ;;  %2068 = vmatprep.subr.bf16.mxu1 %v5296_v45  ;;  %v5303_v50 = vld [vmem:[#allocation2 + $0x2a8] ss:$56 sps:$4 sm:$0xff]  }
  0x2c   :  { %5152 = vmatprep.mubr.msk.f32.mxu0 %vm105_vm0, %v71_v15  ;;  %5198 = vmatmul.mubr.msk.f32.gmra.mxu1 %vm105_vm0, %v102_v16  ;;  %v5302_v48 = vld [vmem:[#allocation2 + $0x2a4] ss:$56 sps:$4 sm:$0xff]   ;;  %v5300_v49 = vld [vmem:[#allocation2 + $0x2a0] ss:$56 sps:$4 sm:$0xff]   ;;  %v5308_v54 = vld [vmem:[#allocation2 + $0x234] ss:$56 sps:$4 sm:$0xff]  }
  0x2d   :  { %5200 = vmatprep.mubr.msk.f32.mxu1 %vm105_vm0, %v103_v17  ;;  %v5305_v51 = vld [vmem:[#allocation2 + $0x2ac] ss:$56 sps:$4 sm:$0xff]   ;;  %2129 = vmatprep.subr.bf16.mxu0 %v5299_v47  ;;  %v5311_v55 = vld [vmem:[#allocation2 + $0x23c] ss:$56 sps:$4 sm:$0xff]   ;;  %v5306_v56 = vld [vmem:[#allocation2 + $0x230] ss:$56 sps:$4 sm:$0xff]  }
  0x2e   :  { %2069 = vmatpush1.bf16.msra.mxu1 %v5294_v44  ;;  %2130 = vmatpush1.bf16.msra.mxu0 %v5297_v46  ;;  %v5309_v57 = vld [vmem:[#allocation2 + $0x238] ss:$56 sps:$4 sm:$0xff]   ;;  %v5314_v61 = vld [vmem:[#allocation2 + $0x1c4] ss:$56 sps:$4 sm:$0xff]   ;;  %v5315_v62 = vld [vmem:[#allocation2 + $0x1c8] ss:$56 sps:$4 sm:$0xff]  }
  0x2f   :  { %5153 = vmatmul.mubr.msk.f32.gmra.mxu0 %vm105_vm0, %v72_v18  ;;  %2070 = vmatprep.subr.bf16.mxu1 %v5302_v48  ;;  %v5312_v60 = vld [vmem:[#allocation2 + $0x1c0] ss:$56 sps:$4 sm:$0xff]   ;;  %v5317_v63 = vld [vmem:[#allocation2 + $0x1cc] ss:$56 sps:$4 sm:$0xff]   ;;  %v5323_v3 = vld [vmem:[#allocation2 + $0x15c] ss:$56 sps:$4 sm:$0xff]  }
  0x30   :  { %5155 = vmatprep.mubr.msk.f32.mxu0 %vm105_vm0, %v73_v19  ;;  %5201 = vmatmul.mubr.msk.f32.gmra.mxu1 %vm105_vm0, %v104_v20  ;;  %v5320_v2 = vld [vmem:[#allocation2 + $0x154] ss:$56 sps:$4 sm:$0xff]   ;;  %v5318_v4 = vld [vmem:[#allocation2 + $0x150] ss:$56 sps:$4 sm:$0xff]   ;;  %v5324_v8 = vld [vmem:[#allocation2 + $0xe0] ss:$56 sps:$4 sm:$0xff]  }
  0x31   :  { %2131 = vmatprep.subr.bf16.mxu0 %v5305_v51  ;;  %v5321_v5 = vld [vmem:[#allocation2 + $0x158] ss:$56 sps:$4 sm:$0xff]   ;;  %v5326_v9 = vld [vmem:[#allocation2 + $0xe4] ss:$56 sps:$4 sm:$0xff]   ;;  %v5327_v10 = vld [vmem:[#allocation2 + $0xe8] ss:$56 sps:$4 sm:$0xff]  }
  0x32   :  { %2071 = vmatpush1.bf16.msra.mxu1 %v5300_v49  ;;  %2132 = vmatpush1.bf16.msra.mxu0 %v5303_v50  ;;  %v5329_v12 = vld [vmem:[#allocation2 + $0xec] ss:$56 sps:$4 sm:$0xff]   ;;  %v5335_v15 = vld [vmem:[#allocation2 + $0x7c] ss:$56 sps:$4 sm:$0xff]   ;;  %v5330_v17 = vld [vmem:[#allocation2 + $0x70] ss:$56 sps:$4 sm:$0xff]  }
  0x33   :  { %5156 = vmatmul.mubr.msk.f32.gmra.mxu0 %vm105_vm0, %v74_v21  ;;  %2072 = vmatprep.subr.bf16.mxu1 %v5308_v54  ;;  %v5332_v13 = vld [vmem:[#allocation2 + $0x74] ss:$56 sps:$4 sm:$0xff]   ;;  %v5333_v18 = vld [vmem:[#allocation2 + $0x78] ss:$56 sps:$4 sm:$0xff]   ;;  %v5338_v19 = vld [vmem:[#allocation2 + $0x4] ss:$56 sps:$4 sm:$0xff]  }
  0x34   :  { %5158 = vmatprep.mubr.msk.f32.mxu0 %vm105_vm0, %v75_v22  ;;  %2133 = vmatprep.subr.bf16.mxu0 %v5311_v55  ;;  %v5341_v20 = vld [vmem:[#allocation2 + $0xc] ss:$56 sps:$4 sm:$0xff]   ;;  %v5360_v49 = vld [vmem:[#allocation2 + $0x540] ss:$56 sps:$4 sm:$0xff]  }
  0x35   :  { %v5362_v44 = vld [vmem:[#allocation2 + $0x544] ss:$56 sps:$4 sm:$0xff]   ;;  %v5363_v50 = vld [vmem:[#allocation2 + $0x548] ss:$56 sps:$4 sm:$0xff]  }
  0x36   :  { %2073 = vmatpush1.bf16.msra.mxu1 %v5306_v56  ;;  %2134 = vmatpush1.bf16.msra.mxu0 %v5309_v57  ;;  %v5365_v45 = vld [vmem:[#allocation2 + $0x54c] ss:$56 sps:$4 sm:$0xff]   ;;  %v5371_v57 = vld [vmem:[#allocation2 + $0x4dc] ss:$56 sps:$4 sm:$0xff]  }
  0x37   :  { %5159 = vmatmul.mubr.msk.f32.gmra.mxu0 %vm105_vm0, %v76_v23  ;;  %2074 = vmatprep.subr.bf16.mxu1 %v5314_v61  ;;  %v5336_v23 = vld [vmem:[#allocation2] ss:$56 sps:$4 sm:$0xff]   ;;  %v5368_v56 = vld [vmem:[#allocation2 + $0x4d4] ss:$56 sps:$4 sm:$0xff]  }
  0x38   :  { %5161 = vmatprep.mubr.msk.f32.mxu0 %vm105_vm0, %v77_v24  ;;  %2135 = vmatprep.subr.bf16.mxu0 %v5317_v63  ;;  %v5339_v24 = vld [vmem:[#allocation2 + $0x8] ss:$56 sps:$4 sm:$0xff]   ;;  %v5369_v61 = vld [vmem:[#allocation2 + $0x4d8] ss:$56 sps:$4 sm:$0xff]  }
  0x3a   :  { %2075 = vmatpush1.bf16.msra.mxu1 %v5312_v60  ;;  %2136 = vmatpush1.bf16.msra.mxu0 %v5315_v62  ;;  %v5366_v60 = vld [vmem:[#allocation2 + $0x4d0] ss:$56 sps:$4 sm:$0xff]  }
  0x3b   :  { %5162 = vmatmul.mubr.msk.f32.gmra.mxu0 %vm105_vm0, %v78_v25  ;;  %2076 = vmatprep.subr.bf16.mxu1 %v5320_v2  ;;  %v5374_v2 = vld [vmem:[#allocation2 + $0x464] ss:$56 sps:$4 sm:$0xff]  }
  0x3c   :  { %5164 = vmatprep.mubr.msk.f32.mxu0 %vm105_vm0, %v79_v26  ;;  %2137 = vmatprep.subr.bf16.mxu0 %v5323_v3  ;;  %v5344_v26 = vld [vmem:[#allocation2 + $0x694] ss:$56 sps:$4 sm:$0xff]  }
  0x3d   :  { %v5377_v3 = vld [vmem:[#allocation2 + $0x46c] ss:$56 sps:$4 sm:$0xff]  }
  0x3e   :  { %2077 = vmatpush1.bf16.msra.mxu1 %v5318_v4  ;;  %2138 = vmatpush1.bf16.msra.mxu0 %v5321_v5  ;;  %v5372_v4 = vld [vmem:[#allocation2 + $0x460] ss:$56 sps:$4 sm:$0xff]  }
  0x3f   :  { %5165 = vmatmul.mubr.msk.f32.gmra.mxu0 %vm105_vm0, %v80_v27  ;;  %2078 = vmatprep.subr.bf16.mxu1 %v5326_v9  ;;  %v5347_v27 = vld [vmem:[#allocation2 + $0x69c] ss:$56 sps:$4 sm:$0xff]   ;;  %v5375_v5 = vld [vmem:[#allocation2 + $0x468] ss:$56 sps:$4 sm:$0xff]  }
  0x40   :  { %5167 = vmatprep.mubr.msk.f32.mxu0 %vm105_vm0, %v81_v28  ;;  %2139 = vmatprep.subr.bf16.mxu0 %v5329_v12  ;;  %v5378_v12 = vld [vmem:[#allocation2 + $0x3f0] ss:$56 sps:$4 sm:$0xff]  }
  0x42   :  { %2079 = vmatpush1.bf16.msra.mxu1 %v5324_v8  ;;  %2140 = vmatpush1.bf16.msra.mxu0 %v5327_v10  ;;  %v5380_v10 = vld [vmem:[#allocation2 + $0x3f4] ss:$56 sps:$4 sm:$0xff]  }
  0x43   :  { %5168 = vmatmul.mubr.msk.f32.gmra.mxu0 %vm105_vm0, %v82_v29  ;;  %2080 = vmatprep.subr.bf16.mxu1 %v5332_v13  ;;  %v5381_v13 = vld [vmem:[#allocation2 + $0x3f8] ss:$56 sps:$4 sm:$0xff]  }
  0x44   :  { %5170 = vmatprep.mubr.msk.f32.mxu0 %vm105_vm0, %v83_v30  ;;  %2141 = vmatprep.subr.bf16.mxu0 %v5335_v15  ;;  %v5342_v30 = vld [vmem:[#allocation2 + $0x690] ss:$56 sps:$4 sm:$0xff]  }
  0x46   :  { %2081 = vmatpush1.bf16.msra.mxu1 %v5330_v17  ;;  %2142 = vmatpush1.bf16.msra.mxu0 %v5333_v18 }
  0x47   :  { %5171 = vmatmul.mubr.msk.f32.gmra.mxu0 %vm105_vm0, %v84_v31  ;;  %2082 = vmatprep.subr.bf16.mxu1 %v5338_v19  ;;  %v5345_v31 = vld [vmem:[#allocation2 + $0x698] ss:$56 sps:$4 sm:$0xff]  }
  0x48   :  { %5173 = vmatprep.mubr.msk.f32.mxu0 %vm105_vm0, %v85_v32  ;;  %2143 = vmatprep.subr.bf16.mxu0 %v5341_v20  ;;  %v5350_v32 = vld [vmem:[#allocation2 + $0x624] ss:$56 sps:$4 sm:$0xff]  }
  0x49   :  { %v5386_v20 = vld [vmem:[#allocation2 + $0x384] ss:$56 sps:$4 sm:$0xff]  }
  0x4a   :  { %2083 = vmatpush1.bf16.msra.mxu1 %v5336_v23  ;;  %2144 = vmatpush1.bf16.msra.mxu0 %v5339_v24  ;;  %v5384_v24 = vld [vmem:[#allocation2 + $0x380] ss:$56 sps:$4 sm:$0xff]  }
  0x4b   :  { %5174 = vmatmul.mubr.msk.f32.gmra.mxu0 %vm105_vm0, %v86_v33  ;;  %2084 = vmatprep.subr.bf16.mxu1 %v5344_v26  ;;  %v5353_v33 = vld [vmem:[#allocation2 + $0x62c] ss:$56 sps:$4 sm:$0xff]  }
  0x4c   :  { %5176 = vmatprep.mubr.msk.f32.mxu0 %vm105_vm0, %v87_v34  ;;  %2145 = vmatprep.subr.bf16.mxu0 %v5347_v27 }
  0x4e   :  { %2085 = vmatpush2.bf16.msra.mxu1 %v5342_v30  ;;  %2146 = vmatpush2.bf16.msra.mxu0 %v5345_v31  ;;  %v5392_v30 = vld [vmem:[#allocation2 + $0x324] ss:$56 sps:$4 sm:$0xff]  }
  0x4f   :  { %5177 = vmatmul.mubr.msk.f32.gmra.mxu0 %vm105_vm0, %v88_v35  ;;  %2086 = vmatprep.subr.bf16.mxu1 %v5350_v32  ;;  %v5395_v31 = vld [vmem:[#allocation2 + $0x32c] ss:$56 sps:$4 sm:$0xff]  }
  0x50   :  { %5179 = vmatprep.mubr.msk.f32.mxu0 %vm105_vm0, %v89_v36  ;;  %v5348_v36 = vld [vmem:[#allocation2 + $0x620] ss:$56 sps:$4 sm:$0xff]   ;;  %2147 = vmatprep.subr.bf16.mxu0 %v5353_v33 }
  0x52   :  { %2087 = vmatpush2.bf16.msra.mxu1 %v5348_v36 }
  0x53   :  { %5180 = vmatmul.mubr.msk.f32.gmra.mxu0 %vm105_vm0, %v90_v37  ;;  %v5351_v37 = vld [vmem:[#allocation2 + $0x628] ss:$56 sps:$4 sm:$0xff]  }
  0x54   :  { %5182 = vmatprep.mubr.msk.f32.mxu0 %vm105_vm0, %v91_v38  ;;  %v5356_v38 = vld [vmem:[#allocation2 + $0x5b4] ss:$56 sps:$4 sm:$0xff]   ;;  %2148 = vmatpush2.bf16.msra.mxu0 %v5351_v37 }
  0x55   :  { %2088 = vmatprep.subr.bf16.mxu1 %v5356_v38 }
  0x57   :  { %5183 = vmatmul.mubr.msk.f32.gmra.mxu0 %vm105_vm0, %v92_v39  ;;  %v5359_v39 = vld [vmem:[#allocation2 + $0x5bc] ss:$56 sps:$4 sm:$0xff]  }
  0x58   :  { %5185 = vmatprep.mubr.msk.f32.mxu0 %vm105_vm0, %v93_v40  ;;  %2149 = vmatprep.subr.bf16.mxu0 %v5359_v39 }
  0x5b   :  { %5186 = vmatmul.mubr.msk.f32.gmra.mxu0 %vm105_vm0, %v94_v41 }
  0x5c   :  { %5188 = vmatprep.mubr.msk.f32.mxu0 %vm105_vm0, %v95_v42  ;;  %v5354_v42 = vld [vmem:[#allocation2 + $0x5b0] ss:$56 sps:$4 sm:$0xff]  }
  0x5d   :  { %2089 = vmatpush2.bf16.msra.mxu1 %v5354_v42 }
  0x5e   :  { %2090 = vmatprep.subr.bf16.mxu1 %v5362_v44 }
  0x5f   :  { %5189 = vmatmul.mubr.msk.f32.gmra.mxu0 %vm105_vm0, %v96_v43  ;;  %v5357_v43 = vld [vmem:[#allocation2 + $0x5b8] ss:$56 sps:$4 sm:$0xff]  }
  0x60   :  { %2150 = vmatpush2.bf16.msra.mxu0 %v5357_v43 }
  0x61   :  { %2151 = vmatprep.subr.bf16.mxu0 %v5365_v45  ;;  %2091 = vmatpush2.bf16.msra.mxu1 %v5360_v49 }
  0x62   :  { %2092 = vmatprep.subr.bf16.mxu1 %v5368_v56 }
  0x64   :  { %2152 = vmatpush2.bf16.msra.mxu0 %v5363_v50 }
  0x65   :  { %2153 = vmatprep.subr.bf16.mxu0 %v5371_v57  ;;  %2093 = vmatpush2.bf16.msra.mxu1 %v5366_v60 }
  0x66   :  { %2094 = vmatprep.subr.bf16.mxu1 %v5374_v2 }
  0x68   :  { %2154 = vmatpush2.bf16.msra.mxu0 %v5369_v61 }
  0x69   :  { %2155 = vmatprep.subr.bf16.mxu0 %v5377_v3  ;;  %2095 = vmatpush2.bf16.msra.mxu1 %v5372_v4 }
  0x6a   :  { %2096 = vmatprep.subr.bf16.mxu1 %v5380_v10 }
  0x6c   :  { %2156 = vmatpush2.bf16.msra.mxu0 %v5375_v5 }
  0x6d   :  { %2097 = vmatpush2.bf16.msra.mxu1 %v5378_v12 }
  0x6e   :  { %2098 = vmatprep.subr.bf16.mxu1 %v5386_v20 }
  0x71   :  { %2099 = vmatpush2.bf16.msra.mxu1 %v5384_v24 }
  0x72   :  { %2190 = vmatprep.subr.bf16.mxu1 %v5392_v30 }
  0xe3   :  { %v6020_v52 = vpop.f32.mrf.mxu0 }
  0xe4   :  { %v6050_v46 = vpop.f32.mrf.mxu1 }
  0xe5   :  { %v6022_v53 = vpop.f32.mrf.mxu0 }
  0xe6   :  { %v6056_v51 = vpop.f32.mrf.mxu1 }
  0xe7   :  { %v6024_v58 = vpop.f32.mrf.mxu0  ;;  %v5257_v39 = vpack.i.bf16 %v6050_v46, %v6056_v51 }
  0xe8   :  { %v5196_v62 = vpop.f32.mrf.mxu1 }
  0xe9   :  { %v6026_v59 = vpop.f32.mrf.mxu0 }
  0xeb   :  { %v5151_v0 = vpop.f32.mrf.mxu0 }
  0xed   :  { %v6028_v1 = vpop.f32.mrf.mxu0 }
  0xef   :  { %v6030_v6 = vpop.f32.mrf.mxu0 }
  0xf1   :  { %v322_v7 = vpop.f32.mrf.mxu0 }
  0xf2   :  { %v5217_v11 = vpack.i.bf16 %v322_v7, %v5151_v0  ;;  %v6066_v7 = vpop.f32.mrf.mxu1 }
  0xf3   :  { %v6032_v14 = vpop.f32.mrf.mxu0 }
  0xf4   :  { %5218 = vrot.lane.b32.xlu0 %v5217_v11, %s5792_s1  ;;  %v5383_v11 = vld [vmem:[#allocation2 + $0x3fc] ss:$56 sps:$4 sm:$0xff]   ;;  %v5199_v15 = vpop.f32.mrf.mxu1 }
  0xf5   :  { %v6035_v16 = vpop.f32.mrf.mxu0  ;;  %2157 = vmatprep.subr.bf16.mxu0 %v5383_v11 }
  0xf6   :  { %2158 = vmatpush2.bf16.msra.mxu0 %v5381_v13  ;;  %v5252_v44 = vpack.i.bf16 %v6035_v16, %v6030_v6  ;;  %v5794_v16 = vmov 0  }
  0xf7   :  { %v5160_v21 = vpop.f32.mrf.mxu0  ;;  %5292 = vset.pattern.permute.xlu1 %v5794_v16  ;;  %5293 = vset.pattern.permute.xlu0 %v5794_v16  ;;  %v5396_v16 = vld [vmem:[#allocation2 + $0x2b0] ss:$56 sps:$4 sm:$0xff]  }
  0xf9   :  { %v342_v22 = vpop.f32.mrf.mxu0 }
  0xfa   :  { %v5222_v25 = vpack.i.bf16 %v5160_v21, %v342_v22  ;;  %v5389_v21 = vld [vmem:[#allocation2 + $0x38c] ss:$56 sps:$4 sm:$0xff]   ;;  %v472_v22 = vpop.f32.mrf.mxu1 }
  0xfb   :  { %v6037_v28 = vpop.f32.mrf.mxu0  ;;  %v5232_v26 = vpack.i.bf16 %v472_v22, %v5196_v62  ;;  %2159 = vmatprep.subr.bf16.mxu0 %v5389_v21 }
  0xfc   :  { %5223 = vrot.lane.b32.xlu1 %v5222_v25, %s5790_s19  ;;  %v5387_v25 = vld [vmem:[#allocation2 + $0x388] ss:$56 sps:$4 sm:$0xff]   ;;  %v5202_v38 = vpop.f32.mrf.mxu1 }
  0xfd   :  { %v6040_v29 = vpop.f32.mrf.mxu0  ;;  %2160 = vmatpush2.bf16.msra.mxu0 %v5387_v25 }
  0xfe   :  { %2251 = vmatprep.subr.bf16.mxu0 %v5395_v31  ;;  %v482_v43 = vpop.f32.mrf.mxu1  ;;  %v5262_v49 = vpack.i.bf16 %v6037_v28, %v6040_v29  ;;  %v2570_v28 = vld [vmem:[%s6509_s7 + $0x18] sm:$0xff]  ;;  %v2569_v29 = vld [vmem:[%s6509_s7 + $0x10] sm:$0xff] }
  0xff   :  { %v6042_v34 = vpop.f32.mrf.mxu0  ;;  %v5267_v45 = vpack.i.bf16 %v482_v43, %v5199_v15 }
 0x101   :  { %v6044_v35 = vpop.f32.mrf.mxu0 }
 0x102   :  { %v5282_v6 = vpack.i.bf16 %v6044_v35, %v6066_v7  ;;  %v2568_v35 = vld [vmem:[%s6509_s7 + $0x8] sm:$0xff] }
 0x103   :  { %v6046_v40 = vpop.f32.mrf.mxu0 }
 0x105   :  { %v6048_v41 = vpop.f32.mrf.mxu0 }
 0x106   :  { %v5242_v42 = vpack.i.bf16 %v6048_v41, %v6042_v34 }
 0x107   :  { %v6052_v47 = vpop.f32.mrf.mxu0 }
 0x108   :  { %v5287_v34 = vpack.i.bf16 %v6052_v47, %v5202_v38  ;;  %v5393_v38 = vld [vmem:[#allocation2 + $0x328] ss:$56 sps:$4 sm:$0xff]  }
 0x109   :  { %v6054_v48 = vpop.f32.mrf.mxu0 }
 0x10a   :  { %v5272_v41 = vpack.i.bf16 %v6054_v48, %v6046_v40  ;;  %v2567_v40 = vld [vmem:[%s6509_s7] sm:$0xff] }
 0x10b   :  { %v6058_v54 = vpop.f32.mrf.mxu0 }
 0x10d   :  { %v6060_v55 = vpop.f32.mrf.mxu0 }
 0x10f   :  { %v6062_v63 = vpop.f32.mrf.mxu0 }
 0x111   :  { %v6064_v0 = vpop.f32.mrf.mxu0 }
 0x113   :  { %v5181_v8 = vpop.f32.mrf.mxu0 }
 0x115   :  { %v6068_v9 = vpop.f32.mrf.mxu0 }
 0x117   :  { %v5184_v17 = vpop.f32.mrf.mxu0 }
 0x119   :  { %v422_v18 = vpop.f32.mrf.mxu0 }
 0x11a   :  { %v5227_v19 = vpack.i.bf16 %v422_v18, %v5181_v8 }
 0x11b   :  { %v5187_v23 = vpop.f32.mrf.mxu0 }
 0x11c   :  { %5228 = vrot.lane.b32.xlu0 %v5227_v19, %s5792_s1  ;;  %v5277_v50 = vpack.i.bf16 %v6032_v14, %v5187_v23  ;;  %v2571_v14 = vld [vmem:[%s6509_s7 + $0x20] sm:$0xff] }
 0x11d   :  { %v432_v27 = vpop.f32.mrf.mxu0 }
 0x11e   :  { %v5247_v36 = vpack.i.bf16 %v432_v27, %v5184_v17 }
 0x11f   :  { %v5190_v32 = vpop.f32.mrf.mxu0 }
 0x120   :  { %5233 = vrot.lane.b32.xlu0 %v5232_v26, %s5793_s14 }
 0x121   :  { %v442_v33 = vpop.f32.mrf.mxu0 }
 0x122   :  { %v5237_v37 = vpack.i.bf16 %v5190_v32, %v442_v33 }
 0x124   :  { %5248 = vrot.lane.b32.xlu0 %v5247_v36, %s5792_s1  ;;  %5238 = vrot.lane.b32.xlu1 %v5237_v37, %s5790_s19  ;;  %v5390_v37 = vld [vmem:[#allocation2 + $0x320] ss:$56 sps:$4 sm:$0xff]  }
 0x128   :  { %5258 = vrot.lane.b32.xlu0 %v5257_v39, %s5790_s19  ;;  %5243 = vrot.lane.b32.xlu1 %v5242_v42, %s5793_s14 }
 0x12c   :  { %5268 = vrot.lane.b32.xlu0 %v5267_v45, %s5793_s14  ;;  %5253 = vrot.lane.b32.xlu1 %v5252_v44, %s5792_s1  ;;  %v5398_v45 = vld [vmem:[#allocation2 + $0x2b4] ss:$56 sps:$4 sm:$0xff]  }
 0x130   :  { %5278 = vrot.lane.b32.xlu0 %v5277_v50, %s5792_s1  ;;  %5263 = vrot.lane.b32.xlu1 %v5262_v49, %s5790_s19  ;;  %v5401_v49 = vld [vmem:[#allocation2 + $0x2bc] ss:$56 sps:$4 sm:$0xff]  }
 0x134   :  { %5288 = vrot.lane.b32.xlu0 %v5287_v34, %s5793_s14  ;;  %5273 = vrot.lane.b32.xlu1 %v5272_v41, %s5793_s14 }
 0x138   :  { %5283 = vrot.lane.b32.xlu1 %v5282_v6, %s5790_s19  ;;  %2638 = vperm.xlu0 %5293, %v2570_v28  }
 0x13c   :  { %2641 = vperm.xlu1 %5292, %v2571_v14   ;;  %2629 = vperm.xlu0 %5293, %v2567_v40   ;;  %v5399_v14 = vld [vmem:[#allocation2 + $0x2b8] ss:$56 sps:$4 sm:$0xff]   ;;  %v5404_v40 = vld [vmem:[#allocation2 + $0x244] ss:$56 sps:$4 sm:$0xff]  }
 0x140   :  { %2635 = vperm.xlu1 %5292, %v2569_v29  }
 0x144   :  { %2632 = vperm.xlu1 %5292, %v2568_v35  }
 0x166   :  { %v5219_v46 = vpop.permute.xlu0 %5218 }
 0x167   :  { %v5221_v60 = vunpack.i.h.bf16 %v5219_v46  ;;  %v5220_v2 = vunpack.i.l.bf16 %v5219_v46  ;;  %v5407_v46 = vld [vmem:[#allocation2 + $0x24c] ss:$56 sps:$4 sm:$0xff]  }
 0x169   :  { %v613_v17 = vsel %vm611_vm1, %v6020_v52, %v5221_v60 }
 0x16e   :  { %v5224_v48 = vpop.permute.xlu1 %5223 }
 0x16f   :  { %v5226_v3 = vunpack.i.h.bf16 %v5224_v48  ;;  %v5225_v12 = vunpack.i.l.bf16 %v5224_v48 }
 0x171   :  { %v619_v25 = vsel %vm617_vm2, %v613_v17, %v5226_v3  ;;  %v5410_v3 = vld [vmem:[#allocation2 + $0x1d4] ss:$56 sps:$4 sm:$0xff]   ;;  %v5411_v17 = vld [vmem:[#allocation2 + $0x1d8] ss:$56 sps:$4 sm:$0xff]  }
 0x18e   :  { %v5229_v47 = vpop.permute.xlu0 %5228 }
 0x18f   :  { %v5231_v56 = vunpack.i.h.bf16 %v5229_v47  ;;  %v5230_v57 = vunpack.i.l.bf16 %v5229_v47 }
 0x191   :  { %v630_v7 = vsel %vm611_vm1, %v6058_v54, %v5231_v56  ;;  %v629_v8 = vsel %vm611_vm1, %v6060_v55, %v5230_v57  ;;  %v612_v55 = vsel %vm611_vm1, %v6022_v53, %v5220_v2  ;;  %v5402_v56 = vld [vmem:[#allocation2 + $0x240] ss:$56 sps:$4 sm:$0xff]  }
 0x192   :  { %v5234_v51 = vpop.permute.xlu0 %5233  ;;  %v618_v52 = vsel %vm617_vm2, %v612_v55, %v5225_v12  ;;  %v5405_v57 = vld [vmem:[#allocation2 + $0x248] ss:$56 sps:$4 sm:$0xff]  }
 0x193   :  { %v5236_v10 = vunpack.i.h.bf16 %v5234_v51  ;;  %v5235_v11 = vunpack.i.l.bf16 %v5234_v51 }
 0x196   :  { %v5249_v61 = vpop.permute.xlu0 %5248  ;;  %v5239_v62 = vpop.permute.xlu1 %5238 }
 0x197   :  { %v5241_v4 = vunpack.i.h.bf16 %v5239_v62  ;;  %v5240_v5 = vunpack.i.l.bf16 %v5239_v62  ;;  %v5251_v18 = vunpack.i.h.bf16 %v5249_v61  ;;  %v5250_v22 = vunpack.i.l.bf16 %v5249_v61 }
 0x199   :  { %v635_v13 = vsel %vm617_vm2, %v630_v7, %v5241_v4  ;;  %v634_v15 = vsel %vm617_vm2, %v629_v8, %v5240_v5  ;;  %v632_v53 = vsel %vm611_vm1, %v6062_v63, %v5251_v18  ;;  %v631_v39 = vsel %vm611_vm1, %v6064_v0, %v5250_v22  ;;  %v5413_v4 = vld [vmem:[#allocation2 + $0x1dc] ss:$56 sps:$4 sm:$0xff]  }
 0x19a   :  { %v640_v19 = vsel %vm623_vm3, %v635_v13, %v5236_v10  ;;  %v639_v20 = vsel %vm623_vm3, %v634_v15, %v5235_v11  ;;  %v5259_v21 = vpop.permute.xlu0 %5258  ;;  %v5244_v54 = vpop.permute.xlu1 %5243  ;;  %v5408_v15 = vld [vmem:[#allocation2 + $0x1d0] ss:$56 sps:$4 sm:$0xff]  }
 0x19b   :  { %v6119_v23 = vpack.c.bf16 %v640_v19, %v639_v20  ;;  %v5246_v24 = vunpack.i.h.bf16 %v5244_v54  ;;  %v5261_v26 = vunpack.i.h.bf16 %v5259_v21  ;;  %v5260_v27 = vunpack.i.l.bf16 %v5259_v21  ;;  %v5416_v20 = vld [vmem:[#allocation2 + $0x164] ss:$56 sps:$4 sm:$0xff]  }
 0x19c   :  { %v5245_v30 = vunpack.i.l.bf16 %v5244_v54  ;;  %v5419_v21 = vld [vmem:[#allocation2 + $0x16c] ss:$56 sps:$4 sm:$0xff]  }
 0x19d   :  { %v625_v31 = vsel %vm623_vm3, %v619_v25, %v5246_v24  ;;  %2100 = vmatprep.mubr.bf16.mxu1 %v6119_v23  ;;  %2161 = vmatprep.mubr.bf16.mxu0 %v6119_v23  ;;  %v636_v50 = vsel %vm617_vm2, %v631_v39, %v5260_v27  ;;  %v637_v34 = vsel %vm617_vm2, %v632_v53, %v5261_v26  ;;  %v5425_v53 = vld [vmem:[#allocation2 + $0xfc] ss:$56 sps:$4 sm:$0xff]   ;;  %v5426_v39 = vld [vmem:[#allocation2 + $0x80] ss:$56 sps:$4 sm:$0xff]  }
 0x19e   :  { %v624_v32 = vsel %vm623_vm3, %v618_v52, %v5245_v30  ;;  %v5269_v33 = vpop.permute.xlu0 %5268  ;;  %v5254_v36 = vpop.permute.xlu1 %5253  ;;  %v5414_v30 = vld [vmem:[#allocation2 + $0x160] ss:$56 sps:$4 sm:$0xff]  }
 0x19f   :  { %v6131_v42 = vpack.c.bf16 %v625_v31, %v624_v32  ;;  %v5271_v43 = vunpack.i.h.bf16 %v5269_v33  ;;  %v5270_v44 = vunpack.i.l.bf16 %v5269_v33  ;;  %v5256_v28 = vunpack.i.h.bf16 %v5254_v36  ;;  %v5417_v52 = vld [vmem:[#allocation2 + $0x168] ss:$56 sps:$4 sm:$0xff]  }
 0x1a0   :  { %v5255_v29 = vunpack.i.l.bf16 %v5254_v36  ;;  %v5420_v33 = vld [vmem:[#allocation2 + $0xf0] ss:$56 sps:$4 sm:$0xff]  }
 0x1a1   :  { %v641_v63 = vsel %vm623_vm3, %v636_v50, %v5270_v44  ;;  %v642_v41 = vsel %vm623_vm3, %v637_v34, %v5271_v43  ;;  %2101 = vmatmul.mubr.bf16.vlgmr.msra.gmra.mxu1 %v6131_v42  ;;  %2162 = vmatmul.mubr.bf16.vlgmr.msra.gmra.mxu0 %v6131_v42  ;;  %v615_v60 = vsel %vm611_vm1, %v6024_v58, %v5256_v28  ;;  %v5423_v36 = vld [vmem:[#allocation2 + $0xf8] ss:$56 sps:$4 sm:$0xff]   ;;  %v5429_v43 = vld [vmem:[#allocation2 + $0x88] ss:$56 sps:$4 sm:$0xff]   ;;  %v5434_v44 = vld [vmem:[#allocation2 + $0x14] ss:$56 sps:$4 sm:$0xff]  }
 0x1a2   :  { %v6139_v6 = vpack.c.bf16 %v642_v41, %v641_v63  ;;  %2191 = vmatpush1.bf16.msra.mxu1 %v5390_v37  ;;  %2252 = vmatpush1.bf16.msra.mxu0 %v5393_v38  ;;  %v5264_v0 = vpop.permute.xlu1 %5263  ;;  %v5279_v35 = vpop.permute.xlu0 %5278  ;;  %v614_v61 = vsel %vm611_vm1, %v6026_v59, %v5255_v29  ;;  %v5428_v37 = vld [vmem:[#allocation2 + $0x84] ss:$56 sps:$4 sm:$0xff]   ;;  %v5435_v50 = vld [vmem:[#allocation2 + $0x18] ss:$56 sps:$4 sm:$0xff]  }
 0x1a3   :  { %2192 = vmatprep.subr.bf16.mxu1 %v5398_v45  ;;  %2253 = vmatprep.subr.bf16.mxu0 %v5401_v49  ;;  %v5266_v47 = vunpack.i.h.bf16 %v5264_v0  ;;  %v5265_v48 = vunpack.i.l.bf16 %v5264_v0  ;;  %v5281_v5 = vunpack.i.h.bf16 %v5279_v35  ;;  %v5280_v7 = vunpack.i.l.bf16 %v5279_v35  ;;  %v5431_v38 = vld [vmem:[#allocation2 + $0x8c] ss:$56 sps:$4 sm:$0xff]   ;;  %v5437_v45 = vld [vmem:[#allocation2 + $0x1c] ss:$56 sps:$4 sm:$0xff]   ;;  %v5432_v49 = vld [vmem:[#allocation2 + $0x10] ss:$56 sps:$4 sm:$0xff]  }
 0x1a4   :  { %2110 = vmatprep.mubr.bf16.mxu1 %v6139_v6  ;;  %2171 = vmatprep.mubr.bf16.mxu0 %v6139_v6  ;;  %v5440_v34 = vld [vmem:[#allocation2 + $0x6a4] ss:$56 sps:$4 sm:$0xff]   ;;  %v5438_v41 = vld [vmem:[#allocation2 + $0x6a0] ss:$56 sps:$4 sm:$0xff]   ;;  %v5444_v28 = vld [vmem:[#allocation2 + $0x630] ss:$56 sps:$4 sm:$0xff]  }
 0x1a5   :  { %v620_v8 = vsel %vm617_vm2, %v614_v61, %v5265_v48  ;;  %v621_v10 = vsel %vm617_vm2, %v615_v60, %v5266_v47  ;;  %v616_v54 = vsel %vm611_vm1, %v6028_v1, %v5281_v5  ;;  %v633_v55 = vsel %vm611_vm1, %v6068_v9, %v5280_v7  ;;  %v5422_v9 = vld [vmem:[#allocation2 + $0xf4] ss:$56 sps:$4 sm:$0xff]   ;;  %v5441_v0 = vld [vmem:[#allocation2 + $0x6a8] ss:$56 sps:$4 sm:$0xff]   ;;  %v5447_v29 = vld [vmem:[#allocation2 + $0x638] ss:$56 sps:$4 sm:$0xff]  }
 0x1a6   :  { %2193 = vmatpush1.bf16.msra.mxu1 %v5396_v16  ;;  %2254 = vmatpush1.bf16.msra.mxu0 %v5399_v14  ;;  %v5274_v51 = vpop.permute.xlu1 %5273  ;;  %v5289_v11 = vpop.permute.xlu0 %5288  ;;  %v5443_v63 = vld [vmem:[#allocation2 + $0x6ac] ss:$56 sps:$4 sm:$0xff]   ;;  %v5449_v14 = vld [vmem:[#allocation2 + $0x63c] ss:$56 sps:$4 sm:$0xff]   ;;  %v5453_v47 = vld [vmem:[#allocation2 + $0x5c8] ss:$56 sps:$4 sm:$0xff]  }
 0x1a7   :  { %v5276_v62 = vunpack.i.h.bf16 %v5274_v51  ;;  %v5275_v2 = vunpack.i.l.bf16 %v5274_v51  ;;  %2194 = vmatprep.subr.bf16.mxu1 %v5404_v40  ;;  %2255 = vmatprep.subr.bf16.mxu0 %v5407_v46  ;;  %v5290_v22 = vunpack.i.l.bf16 %v5289_v11  ;;  %v5291_v24 = vunpack.i.h.bf16 %v5289_v11  ;;  %v5446_v16 = vld [vmem:[#allocation2 + $0x634] ss:$56 sps:$4 sm:$0xff]   ;;  %v5452_v35 = vld [vmem:[#allocation2 + $0x5c4] ss:$56 sps:$4 sm:$0xff]   ;;  %v5450_v46 = vld [vmem:[#allocation2 + $0x5c0] ss:$56 sps:$4 sm:$0xff]  }
 0x1a8   :  { %v5455_v40 = vld [vmem:[#allocation2 + $0x5cc] ss:$56 sps:$4 sm:$0xff]   ;;  %v5461_v51 = vld [vmem:[#allocation2 + $0x55c] ss:$56 sps:$4 sm:$0xff]   ;;  %v5468_v5 = vld [vmem:[#allocation2 + $0x470] ss:$56 sps:$4 sm:$0xff]  }
 0x1a9   :  { %v626_v12 = vsel %vm623_vm3, %v620_v8, %v5275_v2  ;;  %v627_v58 = vsel %vm623_vm3, %v621_v10, %v5276_v62  ;;  %v5458_v48 = vld [vmem:[#allocation2 + $0x554] ss:$56 sps:$4 sm:$0xff]   ;;  %v5464_v60 = vld [vmem:[#allocation2 + $0x4e4] ss:$56 sps:$4 sm:$0xff]   ;;  %v5462_v62 = vld [vmem:[#allocation2 + $0x4e0] ss:$56 sps:$4 sm:$0xff]  }
 0x1aa   :  { %v6151_v13 = vpack.c.bf16 %v627_v58, %v626_v12  ;;  %2195 = vmatpush1.bf16.msra.mxu1 %v5402_v56  ;;  %2256 = vmatpush1.bf16.msra.mxu0 %v5405_v57  ;;  %v5284_v59 = vpop.permute.xlu1 %5283  ;;  %v5456_v56 = vld [vmem:[#allocation2 + $0x550] ss:$56 sps:$4 sm:$0xff]   ;;  %v5467_v61 = vld [vmem:[#allocation2 + $0x4ec] ss:$56 sps:$4 sm:$0xff]   ;;  %v5474_v11 = vld [vmem:[#allocation2 + $0x400] ss:$56 sps:$4 sm:$0xff]  }
 0x1ab   :  { %v5286_v18 = vunpack.i.h.bf16 %v5284_v59  ;;  %v5285_v19 = vunpack.i.l.bf16 %v5284_v59  ;;  %2196 = vmatprep.subr.bf16.mxu1 %v5410_v3  ;;  %2257 = vmatprep.subr.bf16.mxu0 %v5413_v4  ;;  %v5459_v57 = vld [vmem:[#allocation2 + $0x558] ss:$56 sps:$4 sm:$0xff]   ;;  %v5465_v2 = vld [vmem:[#allocation2 + $0x4e8] ss:$56 sps:$4 sm:$0xff]   ;;  %v5470_v3 = vld [vmem:[#allocation2 + $0x474] ss:$56 sps:$4 sm:$0xff]  }
 0x1ac   :  { %2111 = vmatmul.mubr.bf16.gmra.mxu1 %v6151_v13  ;;  %2172 = vmatmul.mubr.bf16.gmra.mxu0 %v6151_v13  ;;  %v5473_v4 = vld [vmem:[#allocation2 + $0x47c] ss:$56 sps:$4 sm:$0xff]   ;;  %v5471_v7 = vld [vmem:[#allocation2 + $0x478] ss:$56 sps:$4 sm:$0xff]   ;;  %v5479_v10 = vld [vmem:[#allocation2 + $0x40c] ss:$56 sps:$4 sm:$0xff]  }
 0x1ad   :  { %v622_v25 = vsel %vm617_vm2, %v616_v54, %v5286_v18  ;;  %v638_v26 = vsel %vm617_vm2, %v633_v55, %v5285_v19  ;;  %v5476_v8 = vld [vmem:[#allocation2 + $0x404] ss:$56 sps:$4 sm:$0xff]   ;;  %v5477_v12 = vld [vmem:[#allocation2 + $0x408] ss:$56 sps:$4 sm:$0xff]   ;;  %v5482_v58 = vld [vmem:[#allocation2 + $0x394] ss:$56 sps:$4 sm:$0xff]  }
 0x1ae   :  { %v643_v27 = vsel %vm623_vm3, %v638_v26, %v5290_v22  ;;  %2197 = vmatpush1.bf16.msra.mxu1 %v5408_v15  ;;  %2258 = vmatpush1.bf16.msra.mxu0 %v5411_v17  ;;  %v628_v1 = vsel %vm623_vm3, %v622_v25, %v5291_v24  ;;  %v5485_v59 = vld [vmem:[#allocation2 + $0x39c] ss:$56 sps:$4 sm:$0xff]   ;;  %v5480_v15 = vld [vmem:[#allocation2 + $0x390] ss:$56 sps:$4 sm:$0xff]   ;;  %v5497_v55 = vld [vmem:[#allocation2 + $0x2cc] ss:$56 sps:$4 sm:$0xff]  }
 0x1af   :  { %v6163_v31 = vpack.c.bf16 %v643_v27, %v643_v27  ;;  %2198 = vmatprep.subr.bf16.mxu1 %v5416_v20  ;;  %2259 = vmatprep.subr.bf16.mxu0 %v5419_v21  ;;  %v6167_v32 = vpack.c.bf16 %v628_v1, %v628_v1  ;;  %v5483_v17 = vld [vmem:[#allocation2 + $0x398] ss:$56 sps:$4 sm:$0xff]   ;;  %v5488_v18 = vld [vmem:[#allocation2 + $0x334] ss:$56 sps:$4 sm:$0xff]   ;;  %v5494_v54 = vld [vmem:[#allocation2 + $0x2c4] ss:$56 sps:$4 sm:$0xff]  }
 0x1b0   :  { %v5491_v19 = vld [vmem:[#allocation2 + $0x33c] ss:$56 sps:$4 sm:$0xff]   ;;  %v5486_v20 = vld [vmem:[#allocation2 + $0x330] ss:$56 sps:$4 sm:$0xff]   ;;  %v5492_v22 = vld [vmem:[#allocation2 + $0x2c0] ss:$56 sps:$4 sm:$0xff]  }
 0x1b1   :  { %2120 = vmatprep.mubr.bf16.mxu1 %v6163_v31  ;;  %2181 = vmatprep.mubr.bf16.mxu0 %v6163_v31  ;;  %v5489_v21 = vld [vmem:[#allocation2 + $0x338] ss:$56 sps:$4 sm:$0xff]   ;;  %v5495_v24 = vld [vmem:[#allocation2 + $0x2c8] ss:$56 sps:$4 sm:$0xff]   ;;  %v5500_v25 = vld [vmem:[#allocation2 + $0x254] ss:$56 sps:$4 sm:$0xff]  }
 0x1b2   :  { %2199 = vmatpush1.bf16.msra.mxu1 %v5414_v30  ;;  %2260 = vmatpush1.bf16.msra.mxu0 %v5417_v52  ;;  %v5503_v26 = vld [vmem:[#allocation2 + $0x25c] ss:$56 sps:$4 sm:$0xff]   ;;  %v5498_v27 = vld [vmem:[#allocation2 + $0x250] ss:$56 sps:$4 sm:$0xff]   ;;  %v5509_v1 = vld [vmem:[#allocation2 + $0x1ec] ss:$56 sps:$4 sm:$0xff]  }
 0x1b3   :  { %2200 = vmatprep.subr.bf16.mxu1 %v5422_v9  ;;  %2261 = vmatprep.subr.bf16.mxu0 %v5425_v53  ;;  %v5501_v30 = vld [vmem:[#allocation2 + $0x258] ss:$56 sps:$4 sm:$0xff]   ;;  %v5506_v52 = vld [vmem:[#allocation2 + $0x1e4] ss:$56 sps:$4 sm:$0xff]   ;;  %v5507_v53 = vld [vmem:[#allocation2 + $0x1e8] ss:$56 sps:$4 sm:$0xff]  }
 0x1b4   :  { %2121 = vmatmul.mubr.bf16.gmra.mxu1 %v6167_v32  ;;  %2182 = vmatmul.mubr.bf16.gmra.mxu0 %v6167_v32  ;;  %v5504_v9 = vld [vmem:[#allocation2 + $0x1e0] ss:$56 sps:$4 sm:$0xff]  }
 0x1b5   :  { %2222 = vmatprep.mubr.bf16.mxu1 %v6119_v23  ;;  %2283 = vmatprep.mubr.bf16.mxu0 %v6119_v23 }
 0x1b6   :  { %2201 = vmatpush1.bf16.msra.mxu1 %v5420_v33  ;;  %2262 = vmatpush1.bf16.msra.mxu0 %v5423_v36  ;;  %v5512_v33 = vld [vmem:[#allocation2 + $0x174] ss:$56 sps:$4 sm:$0xff]  }
 0x1b7   :  { %2202 = vmatprep.subr.bf16.mxu1 %v5428_v37  ;;  %2263 = vmatprep.subr.bf16.mxu0 %v5431_v38  ;;  %v5515_v36 = vld [vmem:[#allocation2 + $0x17c] ss:$56 sps:$4 sm:$0xff]   ;;  %v5510_v37 = vld [vmem:[#allocation2 + $0x170] ss:$56 sps:$4 sm:$0xff]  }
 0x1b8   :  { %v5513_v38 = vld [vmem:[#allocation2 + $0x178] ss:$56 sps:$4 sm:$0xff]  }
 0x1ba   :  { %2203 = vmatpush1.bf16.msra.mxu1 %v5426_v39  ;;  %2264 = vmatpush1.bf16.msra.mxu0 %v5429_v43  ;;  %v5518_v39 = vld [vmem:[#allocation2 + $0x104] ss:$56 sps:$4 sm:$0xff]  }
 0x1bb   :  { %2204 = vmatprep.subr.bf16.mxu1 %v5434_v44  ;;  %2265 = vmatprep.subr.bf16.mxu0 %v5437_v45  ;;  %v5521_v43 = vld [vmem:[#allocation2 + $0x10c] ss:$56 sps:$4 sm:$0xff]   ;;  %v5516_v44 = vld [vmem:[#allocation2 + $0x100] ss:$56 sps:$4 sm:$0xff]  }
 0x1bc   :  { %v5519_v45 = vld [vmem:[#allocation2 + $0x108] ss:$56 sps:$4 sm:$0xff]  }
 0x1be   :  { %2205 = vmatpush1.bf16.msra.mxu1 %v5432_v49  ;;  %2266 = vmatpush1.bf16.msra.mxu0 %v5435_v50  ;;  %v5524_v49 = vld [vmem:[#allocation2 + $0x94] ss:$56 sps:$4 sm:$0xff]  }
 0x1bf   :  { %2206 = vmatprep.subr.bf16.mxu1 %v5440_v34  ;;  %2267 = vmatprep.subr.bf16.mxu0 %v5443_v63  ;;  %v5527_v50 = vld [vmem:[#allocation2 + $0x9c] ss:$56 sps:$4 sm:$0xff]   ;;  %v5522_v34 = vld [vmem:[#allocation2 + $0x90] ss:$56 sps:$4 sm:$0xff]  }
 0x1c0   :  { %v5525_v63 = vld [vmem:[#allocation2 + $0x98] ss:$56 sps:$4 sm:$0xff]  }
 0x1c2   :  { %2207 = vmatpush2.bf16.msra.mxu1 %v5438_v41  ;;  %2268 = vmatpush2.bf16.msra.mxu0 %v5441_v0  ;;  %v5530_v41 = vld [vmem:[#allocation2 + $0x24] ss:$56 sps:$4 sm:$0xff]  }
 0x1c3   :  { %2208 = vmatprep.subr.bf16.mxu1 %v5446_v16  ;;  %2269 = vmatprep.subr.bf16.mxu0 %v5449_v14  ;;  %v5533_v0 = vld [vmem:[#allocation2 + $0x2c] ss:$56 sps:$4 sm:$0xff]   ;;  %v5528_v16 = vld [vmem:[#allocation2 + $0x20] ss:$56 sps:$4 sm:$0xff]  }
 0x1c4   :  { %v5531_v14 = vld [vmem:[#allocation2 + $0x28] ss:$56 sps:$4 sm:$0xff]  }
 0x1c6   :  { %2209 = vmatpush2.bf16.msra.mxu1 %v5444_v28  ;;  %2270 = vmatpush2.bf16.msra.mxu0 %v5447_v29  ;;  %v5536_v28 = vld [vmem:[#allocation2 + $0x6b4] ss:$56 sps:$4 sm:$0xff]  }
 0x1c7   :  { %2210 = vmatprep.subr.bf16.mxu1 %v5452_v35  ;;  %2271 = vmatprep.subr.bf16.mxu0 %v5455_v40  ;;  %v5539_v29 = vld [vmem:[#allocation2 + $0x6bc] ss:$56 sps:$4 sm:$0xff]   ;;  %v5534_v35 = vld [vmem:[#allocation2 + $0x6b0] ss:$56 sps:$4 sm:$0xff]  }
 0x1c8   :  { %v5537_v40 = vld [vmem:[#allocation2 + $0x6b8] ss:$56 sps:$4 sm:$0xff]  }
 0x1ca   :  { %2211 = vmatpush2.bf16.msra.mxu1 %v5450_v46  ;;  %2272 = vmatpush2.bf16.msra.mxu0 %v5453_v47  ;;  %v5542_v46 = vld [vmem:[#allocation2 + $0x644] ss:$56 sps:$4 sm:$0xff]  }
 0x1cb   :  { %2212 = vmatprep.subr.bf16.mxu1 %v5458_v48  ;;  %2273 = vmatprep.subr.bf16.mxu0 %v5461_v51  ;;  %v5545_v47 = vld [vmem:[#allocation2 + $0x64c] ss:$56 sps:$4 sm:$0xff]   ;;  %v5540_v48 = vld [vmem:[#allocation2 + $0x640] ss:$56 sps:$4 sm:$0xff]  }
 0x1cc   :  { %v5543_v51 = vld [vmem:[#allocation2 + $0x648] ss:$56 sps:$4 sm:$0xff]  }
 0x1ce   :  { %2213 = vmatpush2.bf16.msra.mxu1 %v5456_v56  ;;  %2274 = vmatpush2.bf16.msra.mxu0 %v5459_v57  ;;  %v5548_v56 = vld [vmem:[#allocation2 + $0x5d4] ss:$56 sps:$4 sm:$0xff]  }
 0x1cf   :  { %2214 = vmatprep.subr.bf16.mxu1 %v5464_v60  ;;  %2275 = vmatprep.subr.bf16.mxu0 %v5467_v61  ;;  %v5551_v57 = vld [vmem:[#allocation2 + $0x5dc] ss:$56 sps:$4 sm:$0xff]   ;;  %v5546_v60 = vld [vmem:[#allocation2 + $0x5d0] ss:$56 sps:$4 sm:$0xff]  }
 0x1d0   :  { %v5549_v61 = vld [vmem:[#allocation2 + $0x5d8] ss:$56 sps:$4 sm:$0xff]  }
 0x1d2   :  { %2215 = vmatpush2.bf16.msra.mxu1 %v5462_v62  ;;  %2276 = vmatpush2.bf16.msra.mxu0 %v5465_v2  ;;  %v5554_v62 = vld [vmem:[#allocation2 + $0x564] ss:$56 sps:$4 sm:$0xff]  }
 0x1d3   :  { %2216 = vmatprep.subr.bf16.mxu1 %v5470_v3  ;;  %2277 = vmatprep.subr.bf16.mxu0 %v5473_v4  ;;  %v5557_v2 = vld [vmem:[#allocation2 + $0x56c] ss:$56 sps:$4 sm:$0xff]   ;;  %v5552_v3 = vld [vmem:[#allocation2 + $0x560] ss:$56 sps:$4 sm:$0xff]  }
 0x1d4   :  { %v5555_v4 = vld [vmem:[#allocation2 + $0x568] ss:$56 sps:$4 sm:$0xff]  }
 0x1d6   :  { %2217 = vmatpush2.bf16.msra.mxu1 %v5468_v5  ;;  %2278 = vmatpush2.bf16.msra.mxu0 %v5471_v7  ;;  %v5560_v5 = vld [vmem:[#allocation2 + $0x4f4] ss:$56 sps:$4 sm:$0xff]  }
 0x1d7   :  { %2218 = vmatprep.subr.bf16.mxu1 %v5476_v8  ;;  %2279 = vmatprep.subr.bf16.mxu0 %v5479_v10  ;;  %v5563_v7 = vld [vmem:[#allocation2 + $0x4fc] ss:$56 sps:$4 sm:$0xff]   ;;  %v5558_v8 = vld [vmem:[#allocation2 + $0x4f0] ss:$56 sps:$4 sm:$0xff]  }
 0x1d8   :  { %v5561_v10 = vld [vmem:[#allocation2 + $0x4f8] ss:$56 sps:$4 sm:$0xff]  }
 0x1da   :  { %2219 = vmatpush2.bf16.msra.mxu1 %v5474_v11  ;;  %2280 = vmatpush2.bf16.msra.mxu0 %v5477_v12  ;;  %v5566_v11 = vld [vmem:[#allocation2 + $0x484] ss:$56 sps:$4 sm:$0xff]  }
 0x1db   :  { %2220 = vmatprep.subr.bf16.mxu1 %v5482_v58  ;;  %2281 = vmatprep.subr.bf16.mxu0 %v5485_v59  ;;  %v5569_v12 = vld [vmem:[#allocation2 + $0x48c] ss:$56 sps:$4 sm:$0xff]   ;;  %v5564_v58 = vld [vmem:[#allocation2 + $0x480] ss:$56 sps:$4 sm:$0xff]  }
 0x1dc   :  { %v5567_v59 = vld [vmem:[#allocation2 + $0x488] ss:$56 sps:$4 sm:$0xff]  }
 0x1de   :  { %2221 = vmatpush2.bf16.msra.mxu1 %v5480_v15  ;;  %2282 = vmatpush2.bf16.msra.mxu0 %v5483_v17  ;;  %v5572_v15 = vld [vmem:[#allocation2 + $0x414] ss:$56 sps:$4 sm:$0xff]  }
 0x1df   :  { %2312 = vmatprep.subr.bf16.mxu1 %v5488_v18  ;;  %2373 = vmatprep.subr.bf16.mxu0 %v5491_v19  ;;  %v5575_v17 = vld [vmem:[#allocation2 + $0x41c] ss:$56 sps:$4 sm:$0xff]   ;;  %v5570_v18 = vld [vmem:[#allocation2 + $0x410] ss:$56 sps:$4 sm:$0xff]  }
 0x1e0   :  { %v5573_v19 = vld [vmem:[#allocation2 + $0x418] ss:$56 sps:$4 sm:$0xff]  }
 0x1e1   :  { %2223 = vmatmul.mubr.bf16.vlgmr.msra.gmra.mxu1 %v6131_v42  ;;  %2284 = vmatmul.mubr.bf16.vlgmr.msra.gmra.mxu0 %v6131_v42 }
 0x1e2   :  { %2232 = vmatprep.mubr.bf16.mxu1 %v6139_v6  ;;  %2293 = vmatprep.mubr.bf16.mxu0 %v6139_v6 }
 0x1e3   :  { %2313 = vmatpush1.bf16.msra.mxu1 %v5486_v20  ;;  %2374 = vmatpush1.bf16.msra.mxu0 %v5489_v21  ;;  %v5578_v20 = vld [vmem:[#allocation2 + $0x3a4] ss:$56 sps:$4 sm:$0xff]  }
 0x1e4   :  { %2314 = vmatprep.subr.bf16.mxu1 %v5494_v54  ;;  %2375 = vmatprep.subr.bf16.mxu0 %v5497_v55  ;;  %v5581_v21 = vld [vmem:[#allocation2 + $0x3ac] ss:$56 sps:$4 sm:$0xff]   ;;  %v5576_v54 = vld [vmem:[#allocation2 + $0x3a0] ss:$56 sps:$4 sm:$0xff]  }
 0x1e5   :  { %v5579_v55 = vld [vmem:[#allocation2 + $0x3a8] ss:$56 sps:$4 sm:$0xff]  }
 0x1e7   :  { %2315 = vmatpush1.bf16.msra.mxu1 %v5492_v22  ;;  %2376 = vmatpush1.bf16.msra.mxu0 %v5495_v24  ;;  %v5584_v22 = vld [vmem:[#allocation2 + $0x344] ss:$56 sps:$4 sm:$0xff]   ;;  %v5582_v24 = vld [vmem:[#allocation2 + $0x340] ss:$56 sps:$4 sm:$0xff]  }
 0x1e8   :  { %2316 = vmatprep.subr.bf16.mxu1 %v5500_v25  ;;  %2377 = vmatprep.subr.bf16.mxu0 %v5503_v26  ;;  %v5587_v25 = vld [vmem:[#allocation2 + $0x2d4] ss:$56 sps:$4 sm:$0xff]   ;;  %v5585_v26 = vld [vmem:[#allocation2 + $0x2d0] ss:$56 sps:$4 sm:$0xff]  }
 0x1e9   :  { %2233 = vmatmul.mubr.bf16.gmra.mxu1 %v6151_v13  ;;  %2294 = vmatmul.mubr.bf16.gmra.mxu0 %v6151_v13 }
 0x1ea   :  { %2242 = vmatprep.mubr.bf16.mxu1 %v6163_v31  ;;  %2303 = vmatprep.mubr.bf16.mxu0 %v6163_v31 }
 0x1eb   :  { %2317 = vmatpush1.bf16.msra.mxu1 %v5498_v27  ;;  %2378 = vmatpush1.bf16.msra.mxu0 %v5501_v30  ;;  %v5590_v27 = vld [vmem:[#allocation2 + $0x264] ss:$56 sps:$4 sm:$0xff]   ;;  %v5588_v30 = vld [vmem:[#allocation2 + $0x260] ss:$56 sps:$4 sm:$0xff]  }
 0x1ec   :  { %2318 = vmatprep.subr.bf16.mxu1 %v5506_v52  ;;  %2379 = vmatprep.subr.bf16.mxu0 %v5509_v1  ;;  %v5593_v52 = vld [vmem:[#allocation2 + $0x1f4] ss:$56 sps:$4 sm:$0xff]   ;;  %v5591_v1 = vld [vmem:[#allocation2 + $0x1f0] ss:$56 sps:$4 sm:$0xff]  }
 0x1ef   :  { %2319 = vmatpush1.bf16.msra.mxu1 %v5504_v9  ;;  %2380 = vmatpush1.bf16.msra.mxu0 %v5507_v53  ;;  %v5596_v9 = vld [vmem:[#allocation2 + $0x184] ss:$56 sps:$4 sm:$0xff]   ;;  %v5594_v53 = vld [vmem:[#allocation2 + $0x180] ss:$56 sps:$4 sm:$0xff]  }
 0x1f0   :  { %2320 = vmatprep.subr.bf16.mxu1 %v5512_v33  ;;  %2381 = vmatprep.subr.bf16.mxu0 %v5515_v36  ;;  %v5599_v33 = vld [vmem:[#allocation2 + $0x114] ss:$56 sps:$4 sm:$0xff]   ;;  %v5795_v36 = vmov 0.0  }
 0x1f1   :  { %2243 = vmatmul.mubr.bf16.gmra.mxu1 %v6167_v32  ;;  %2304 = vmatmul.mubr.bf16.gmra.mxu0 %v6167_v32 }
 0x1f2   :  { %2344 = vmatprep.mubr.bf16.mxu1 %v6119_v23  ;;  %2405 = vmatprep.mubr.bf16.mxu0 %v6119_v23 }
 0x1f3   :  { %2321 = vmatpush1.bf16.msra.mxu1 %v5510_v37  ;;  %2382 = vmatpush1.bf16.msra.mxu0 %v5513_v38  ;;  %v5597_v37 = vld [vmem:[#allocation2 + $0x110] ss:$56 sps:$4 sm:$0xff]   ;;  %v5602_v38 = vld [vmem:[#allocation2 + $0xa4] ss:$56 sps:$4 sm:$0xff]  }
 0x1f4   :  { %2322 = vmatprep.subr.bf16.mxu1 %v5518_v39  ;;  %2383 = vmatprep.subr.bf16.mxu0 %v5521_v43  ;;  %v5600_v39 = vld [vmem:[#allocation2 + $0xa0] ss:$56 sps:$4 sm:$0xff]   ;;  %v5605_v43 = vld [vmem:[#allocation2 + $0x34] ss:$56 sps:$4 sm:$0xff]  }
 0x1f7   :  { %2323 = vmatpush1.bf16.msra.mxu1 %v5516_v44  ;;  %2384 = vmatpush1.bf16.msra.mxu0 %v5519_v45  ;;  %v5603_v44 = vld [vmem:[#allocation2 + $0x30] ss:$56 sps:$4 sm:$0xff]   ;;  %v5608_v45 = vld [vmem:[#allocation2 + $0x6c4] ss:$56 sps:$4 sm:$0xff]  }
 0x1f8   :  { %2324 = vmatprep.subr.bf16.mxu1 %v5524_v49  ;;  %2385 = vmatprep.subr.bf16.mxu0 %v5527_v50  ;;  %v5606_v49 = vld [vmem:[#allocation2 + $0x6c0] ss:$56 sps:$4 sm:$0xff]   ;;  %v5611_v50 = vld [vmem:[#allocation2 + $0x654] ss:$56 sps:$4 sm:$0xff]  }
 0x1fb   :  { %2325 = vmatpush1.bf16.msra.mxu1 %v5522_v34  ;;  %2386 = vmatpush1.bf16.msra.mxu0 %v5525_v63  ;;  %v5614_v34 = vld [vmem:[#allocation2 + $0x5e4] ss:$56 sps:$4 sm:$0xff]   ;;  %v5612_v63 = vld [vmem:[#allocation2 + $0x5e0] ss:$56 sps:$4 sm:$0xff]  }
 0x1fc   :  { %2326 = vmatprep.subr.bf16.mxu1 %v5530_v41  ;;  %2387 = vmatprep.subr.bf16.mxu0 %v5533_v0  ;;  %v5617_v41 = vld [vmem:[#allocation2 + $0x574] ss:$56 sps:$4 sm:$0xff]   ;;  %v5615_v0 = vld [vmem:[#allocation2 + $0x570] ss:$56 sps:$4 sm:$0xff]  }
 0x1ff   :  { %2327 = vmatpush1.bf16.msra.mxu1 %v5528_v16  ;;  %2388 = vmatpush1.bf16.msra.mxu0 %v5531_v14  ;;  %v5620_v16 = vld [vmem:[#allocation2 + $0x504] ss:$56 sps:$4 sm:$0xff]   ;;  %v5618_v14 = vld [vmem:[#allocation2 + $0x500] ss:$56 sps:$4 sm:$0xff]  }
 0x200   :  { %2328 = vmatprep.subr.bf16.mxu1 %v5536_v28  ;;  %2389 = vmatprep.subr.bf16.mxu0 %v5539_v29  ;;  %v5623_v28 = vld [vmem:[#allocation2 + $0x494] ss:$56 sps:$4 sm:$0xff]   ;;  %v5621_v29 = vld [vmem:[#allocation2 + $0x490] ss:$56 sps:$4 sm:$0xff]  }
 0x203   :  { %2329 = vmatpush2.bf16.msra.mxu1 %v5534_v35  ;;  %2390 = vmatpush2.bf16.msra.mxu0 %v5537_v40  ;;  %v5626_v35 = vld [vmem:[#allocation2 + $0x424] ss:$56 sps:$4 sm:$0xff]   ;;  %v5624_v40 = vld [vmem:[#allocation2 + $0x420] ss:$56 sps:$4 sm:$0xff]  }
 0x204   :  { %2330 = vmatprep.subr.bf16.mxu1 %v5542_v46  ;;  %2391 = vmatprep.subr.bf16.mxu0 %v5545_v47  ;;  %v5629_v46 = vld [vmem:[#allocation2 + $0x3b4] ss:$56 sps:$4 sm:$0xff]   ;;  %v5627_v47 = vld [vmem:[#allocation2 + $0x3b0] ss:$56 sps:$4 sm:$0xff]  }
 0x207   :  { %2331 = vmatpush2.bf16.msra.mxu1 %v5540_v48  ;;  %2392 = vmatpush2.bf16.msra.mxu0 %v5543_v51 }
 0x208   :  { %2332 = vmatprep.subr.bf16.mxu1 %v5548_v56  ;;  %2393 = vmatprep.subr.bf16.mxu0 %v5551_v57 }
 0x20b   :  { %2333 = vmatpush2.bf16.msra.mxu1 %v5546_v60  ;;  %2394 = vmatpush2.bf16.msra.mxu0 %v5549_v61 }
 0x20c   :  { %2334 = vmatprep.subr.bf16.mxu1 %v5554_v62  ;;  %2395 = vmatprep.subr.bf16.mxu0 %v5557_v2  ;;  %v878_v62 = vlaneseq }
 0x20f   :  { %2335 = vmatpush2.bf16.msra.mxu1 %v5552_v3  ;;  %2396 = vmatpush2.bf16.msra.mxu0 %v5555_v4  ;;  %v6210_v4 = vshrl.u32 %v878_v62, 7 }
 0x210   :  { %2336 = vmatprep.subr.bf16.mxu1 %v5560_v5  ;;  %2397 = vmatprep.subr.bf16.mxu0 %v5563_v7 }
 0x213   :  { %2337 = vmatpush2.bf16.msra.mxu1 %v5558_v8  ;;  %2398 = vmatpush2.bf16.msra.mxu0 %v5561_v10  ;;  %v6220_v10 = vsub.s32 0, %v6210_v4 }
 0x214   :  { %2338 = vmatprep.subr.bf16.mxu1 %v5566_v11  ;;  %2399 = vmatprep.subr.bf16.mxu0 %v5569_v12 }
 0x217   :  { %2339 = vmatpush2.bf16.msra.mxu1 %v5564_v58  ;;  %2400 = vmatpush2.bf16.msra.mxu0 %v5567_v59  ;;  %v6235_v58 = vld [vmem:[%s6510_s8] sm:$0xff] }
 0x218   :  { %2340 = vmatprep.subr.bf16.mxu1 %v5572_v15  ;;  %2401 = vmatprep.subr.bf16.mxu0 %v5575_v17 }
 0x21b   :  { %2341 = vmatpush2.bf16.msra.mxu1 %v5570_v18  ;;  %2402 = vmatpush2.bf16.msra.mxu0 %v5573_v19 }
 0x21c   :  { %2342 = vmatprep.subr.bf16.mxu1 %v5578_v20  ;;  %2403 = vmatprep.subr.bf16.mxu0 %v5581_v21 }
 0x21f   :  { %2343 = vmatpush2.bf16.msra.mxu1 %v5576_v54  ;;  %2404 = vmatpush2.bf16.msra.mxu0 %v5579_v55  ;;  %v6250_v55 = vrot.slane %v6235_v58, %v6220_v10 }
 0x220   :  { %2434 = vmatprep.subr.bf16.mxu1 %v5584_v22 }
 0x222   :  { %2345 = vmatmul.mubr.bf16.vlgmr.msra.gmra.mxu1 %v6131_v42  ;;  %2406 = vmatmul.mubr.bf16.vlgmr.msra.gmra.mxu0 %v6131_v42 }
 0x223   :  { %2354 = vmatprep.mubr.bf16.mxu1 %v6139_v6  ;;  %2415 = vmatprep.mubr.bf16.mxu0 %v6139_v6 }
 0x224   :  { %2435 = vmatpush1.bf16.msra.mxu1 %v5582_v24 }
 0x225   :  { %2436 = vmatprep.subr.bf16.mxu1 %v5587_v25 }
 0x228   :  { %2437 = vmatpush1.bf16.msra.mxu1 %v5585_v26 }
 0x229   :  { %2438 = vmatprep.subr.bf16.mxu1 %v5590_v27  ;;  %v6252_v27 = vpop.permute.xlu0 %2638 }
 0x22a   :  { %2355 = vmatmul.mubr.bf16.gmra.mxu1 %v6151_v13  ;;  %2416 = vmatmul.mubr.bf16.gmra.mxu0 %v6151_v13  ;;  %vm2685_vm7 = vcmp.eq.s32.totalorder %v6250_v55, %v6252_v27 }
 0x22b   :  { %2364 = vmatprep.mubr.bf16.mxu1 %v6163_v31  ;;  %2425 = vmatprep.mubr.bf16.mxu0 %v6163_v31 }
 0x22c   :  { %2439 = vmatpush1.bf16.msra.mxu1 %v5588_v30  ;;  %v6255_v30 = vsub.s32 2, %v6210_v4 }
 0x22d   :  { %2440 = vmatprep.subr.bf16.mxu1 %v5593_v52 }
 0x230   :  { %2441 = vmatpush1.bf16.msra.mxu1 %v5591_v1 }
 0x231   :  { %2442 = vmatprep.subr.bf16.mxu1 %v5596_v9 }
 0x232   :  { %2365 = vmatmul.mubr.bf16.gmra.mxu1 %v6167_v32  ;;  %2426 = vmatmul.mubr.bf16.gmra.mxu0 %v6167_v32 }
 0x233   :  { %2466 = vmatprep.mubr.bf16.mxu1 %v6119_v23  ;;  %2852 = vmatprep.mubr.f32.mxu0 %v5795_v36  ;;  %v5609_v23 = vld [vmem:[#allocation2 + $0x650] ss:$56 sps:$4 sm:$0xff]  }
 0x234   :  { %2443 = vmatpush1.bf16.msra.mxu1 %v5594_v53  ;;  %v6260_v53 = vsub.s32 3, %v6210_v4 }
 0x235   :  { %2444 = vmatprep.subr.bf16.mxu1 %v5599_v33 }
 0x238   :  { %2445 = vmatpush1.bf16.msra.mxu1 %v5597_v37 }
 0x239   :  { %2446 = vmatprep.subr.bf16.mxu1 %v5602_v38 }
 0x23c   :  { %2447 = vmatpush1.bf16.msra.mxu1 %v5600_v39 }
 0x23d   :  { %2448 = vmatprep.subr.bf16.mxu1 %v5605_v43 }
 0x240   :  { %2449 = vmatpush1.bf16.msra.mxu1 %v5603_v44 }
 0x241   :  { %2450 = vmatprep.subr.bf16.mxu1 %v5608_v45 }
 0x244   :  { %2451 = vmatpush2.bf16.msra.mxu1 %v5606_v49 }
 0x245   :  { %2452 = vmatprep.subr.bf16.mxu1 %v5611_v50 }
 0x248   :  { %2453 = vmatpush2.bf16.msra.mxu1 %v5609_v23 }
 0x249   :  { %2454 = vmatprep.subr.bf16.mxu1 %v5614_v34 }
 0x24c   :  { %2455 = vmatpush2.bf16.msra.mxu1 %v5612_v63 }
 0x24d   :  { %2456 = vmatprep.subr.bf16.mxu1 %v5617_v41 }
 0x250   :  { %2457 = vmatpush2.bf16.msra.mxu1 %v5615_v0 }
 0x251   :  { %2458 = vmatprep.subr.bf16.mxu1 %v5620_v16 }
 0x254   :  { %2459 = vmatpush2.bf16.msra.mxu1 %v5618_v14  ;;  %v6278_v14 = vpop.permute.xlu0 %2629 }
 0x255   :  { %2460 = vmatprep.subr.bf16.mxu1 %v5623_v28  ;;  %vm2643_vm13 = vcmp.eq.s32.totalorder %v6250_v55, %v6278_v14 }
 0x258   :  { %2461 = vmatpush2.bf16.msra.mxu1 %v5621_v29 }
 0x259   :  { %2462 = vmatprep.subr.bf16.mxu1 %v5626_v35  ;;  %v2587_v35 = vrot.slane %v6235_v58, %v6260_v53 }
 0x25b   :  { %vm2688_vm1 = vcmp.eq.s32.totalorder %v2587_v35, %v6252_v27 }
 0x25c   :  { %2463 = vmatpush2.bf16.msra.mxu1 %v5624_v40 }
 0x25d   :  { %2464 = vmatprep.subr.bf16.mxu1 %v5629_v46 }
 0x260   :  { %2465 = vmatpush2.bf16.msra.mxu1 %v5627_v47  ;;  %v2583_v47 = vrot.slane %v6235_v58, %v6255_v30 }
 0x261   :  { %v6197_v48 = vpop.f32.mrf.mxu1  ;;  %v6199_v51 = vpop.f32.mrf.mxu0 }
 0x262   :  { %vm2687_vm2 = vcmp.eq.s32.totalorder %v2583_v47, %v6252_v27 }
 0x263   :  { %2467 = vmatmul.mubr.bf16.vlgmr.msra.gmra.mxu1 %v6131_v42  ;;  %v2104_v56 = vpop.f32.mrf.mxu1  ;;  %v6202_v57 = vpop.f32.mrf.mxu0 }
 0x264   :  { %2476 = vmatprep.mubr.bf16.mxu1 %v6139_v6  ;;  %v6217_v6 = vpop.permute.xlu1 %2641 }
 0x265   :  { %v2106_v60 = vpop.f32.mrf.mxu1  ;;  %v6205_v61 = vpop.f32.mrf.mxu0  ;;  %vm2699_vm5 = vcmp.eq.s32.totalorder %v6250_v55, %v6217_v6  ;;  %vm2702_vm14 = vcmp.eq.s32.totalorder %v2587_v35, %v6217_v6  ;;  %vm2701_vm0 = vcmp.eq.s32.totalorder %v2583_v47, %v6217_v6 }
 0x267   :  { %v2108_v2 = vpop.f32.mrf.mxu1  ;;  %v6207_v3 = vpop.f32.mrf.mxu0 }
 0x268   :  { %v6246_v54 = vpop.permute.xlu1 %2635 }
 0x269   :  { %vm2671_vm9 = vcmp.eq.s32.totalorder %v6250_v55, %v6246_v54  ;;  %vm2674_vm3 = vcmp.eq.s32.totalorder %v2587_v35, %v6246_v54 }
 0x26b   :  { %2477 = vmatmul.mubr.bf16.gmra.mxu1 %v6151_v13  ;;  %v6227_v13 = vld [vmem:[%s6505_s3] sm:$0xff] }
 0x26c   :  { %2486 = vmatprep.mubr.bf16.mxu1 %v6163_v31  ;;  %v2112_v5 = vpop.f32.mrf.mxu1  ;;  %v6213_v42 = vpop.f32.mrf.mxu0  ;;  %v6230_v31 = vsub.s32 1, %v6210_v4  ;;  %v881_v17 = vrot.slane %v6227_v13, %v6220_v10  ;;  %v889_v23 = vrot.slane %v6227_v13, %v6255_v30  ;;  %v893_v0 = vrot.slane %v6227_v13, %v6260_v53 }
 0x26d   :  { %v6268_v50 = vpop.permute.xlu1 %2632 }
 0x26e   :  { %v2114_v7 = vpop.f32.mrf.mxu1  ;;  %v6215_v8 = vpop.f32.mrf.mxu0  ;;  %v6242_v20 = vrot.slane %v6235_v58, %v6230_v31  ;;  %v885_v21 = vrot.slane %v6227_v13, %v6230_v31  ;;  %v2113_v38 = vadd.f32 %v2112_v5, %v881_v17  ;;  %v2107_v34 = vadd.f32 %v2106_v60, %v881_v17 }
 0x26f   :  { %v2103_v28 = vadd.f32 %v6197_v48, %v881_v17  ;;  %vm2657_vm11 = vcmp.eq.s32.totalorder %v6250_v55, %v6268_v50 }
 0x270   :  { %v2116_v11 = vpop.f32.mrf.mxu1  ;;  %v6222_v12 = vpop.f32.mrf.mxu0  ;;  %vm2700_vm4 = vcmp.eq.s32.totalorder %v6242_v20, %v6217_v6  ;;  %v2115_v33 = vadd.f32 %v2114_v7, %v885_v21  ;;  %vm2686_vm6 = vcmp.eq.s32.totalorder %v6242_v20, %v6252_v27  ;;  %v2109_v45 = vadd.f32 %v2108_v2, %v885_v21  ;;  %v6298_v7 = vld [vmem:[%s6508_s6] sm:$0xff] }
 0x271   :  { %v2117_v52 = vadd.f32 %v2116_v11, %v881_v17  ;;  %vm2672_vm8 = vcmp.eq.s32.totalorder %v6242_v20, %v6246_v54  ;;  %v2105_v41 = vadd.f32 %v2104_v56, %v885_v21  ;;  %v2523_v29 = vmax.f32 %v2113_v38, 0.0 }
 0x272   :  { %v2118_v59 = vpop.f32.mrf.mxu1  ;;  %v2179_v15 = vpop.f32.mrf.mxu0  ;;  %v2524_v16 = vmax.f32 %v2115_v33, 0.0  ;;  %vm2658_vm10 = vcmp.eq.s32.totalorder %v6242_v20, %v6268_v50  ;;  %v2510_v40 = vmax.f32 %v2109_v45, 0.0  ;;  %v2509_v56 = vmax.f32 %v2107_v34, 0.0 }
 0x273   :  { %2487 = vmatmul.mubr.bf16.gmra.mxu1 %v6167_v32  ;;  %v2119_v25 = vadd.f32 %v2118_v59, %v885_v21  ;;  %v2537_v63 = vmax.f32 %v2117_v52, 0.0  ;;  %vm2644_vm12 = vcmp.eq.s32.totalorder %v6242_v20, %v6278_v14  ;;  %v2496_v48 = vmax.f32 %v2105_v41, 0.0 }
 0x274   :  { %v2122_v18 = vpop.f32.mrf.mxu1  ;;  %v2183_v19 = vpop.f32.mrf.mxu0  ;;  %v2180_v62 = vadd.f32 %v2179_v15, %v893_v0  ;;  %v2495_v2 = vmax.f32 %v2103_v28, 0.0  ;;  %v2178_v5 = vadd.f32 %v6222_v12, %v889_v23  ;;  %v2176_v11 = vadd.f32 %v6215_v8, %v893_v0 }
 0x275   :  { %v2123_v22 = vadd.f32 %v2122_v18, %v881_v17  ;;  %v2538_v49 = vmax.f32 %v2119_v25, 0.0  ;;  %v2184_v60 = vadd.f32 %v2183_v19, %v889_v23  ;;  %v2174_v15 = vadd.f32 %v6213_v42, %v889_v23 }
 0x276   :  { %v2124_v32 = vpop.f32.mrf.mxu1  ;;  %v2185_v24 = vpop.f32.mrf.mxu0  ;;  %v2170_v12 = vadd.f32 %v6207_v3, %v893_v0  ;;  %v2540_v18 = vmax.f32 %v2180_v62, 0.0  ;;  %v2168_v8 = vadd.f32 %v6205_v61, %v889_v23  ;;  %v2539_v19 = vmax.f32 %v2178_v5, 0.0 }
 0x277   :  { %v2125_v26 = vadd.f32 %v2124_v32, %v885_v21  ;;  %v2551_v39 = vmax.f32 %v2123_v22, 0.0  ;;  %v2186_v46 = vadd.f32 %v2185_v24, %v893_v0  ;;  %v2553_v17 = vmax.f32 %v2184_v60, 0.0 }
 0x278   :  { %v2126_v1 = vpop.f32.mrf.mxu1  ;;  %v2187_v9 = vpop.f32.mrf.mxu0  ;;  %v2166_v42 = vadd.f32 %v6202_v57, %v893_v0  ;;  %v2526_v20 = vmax.f32 %v2176_v11, 0.0  ;;  %v2164_v3 = vadd.f32 %v6199_v51, %v889_v23  ;;  %v2525_v21 = vmax.f32 %v2174_v15, 0.0 }
 0x279   :  { %v2552_v37 = vmax.f32 %v2125_v26, 0.0  ;;  %v2554_v59 = vmax.f32 %v2186_v46, 0.0  ;;  %v2512_v55 = vmax.f32 %v2170_v12, 0.0  ;;  %v2511_v61 = vmax.f32 %v2168_v8, 0.0 }
 0x27a   :  { %v2127_v43 = vpop.f32.mrf.mxu1  ;;  %v2188_v44 = vpop.f32.mrf.mxu0  ;;  %v2498_v22 = vmax.f32 %v2166_v42, 0.0  ;;  %v2497_v57 = vmax.f32 %v2164_v3, 0.0  ;;  %v904_v60 = vsub.s32 6, %v6210_v4  ;;  %v908_v5 = vsub.s32 7, %v6210_v4 }
 0x27b   :  { %4753 = vmatprep.subr.msk.mxu0 %vm2700_vm4, %v2552_v37  ;;  %vm2673_vm4 = vcmp.eq.s32.totalorder %v2583_v47, %v6246_v54  ;;  %v6334_v43 = vsub.s32 4, %v6210_v4 }
 0x27c   :  { %4754 = vmatpush1.msk.msra.mxu0 %vm2699_vm5, %v2551_v39  ;;  %vm2660_vm5 = vcmp.eq.s32.totalorder %v2587_v35, %v6268_v50  ;;  %v905_v42 = vrot.slane %v6227_v13, %v904_v60 }
 0x27d   :  { %4755 = vmatprep.subr.msk.mxu0 %vm2686_vm6, %v2538_v49  ;;  %vm2659_vm6 = vcmp.eq.s32.totalorder %v2583_v47, %v6268_v50  ;;  %v6337_v49 = vsub.s32 5, %v6210_v4 }
 0x27e   :  { %4756 = vmatpush1.msk.msra.mxu0 %vm2685_vm7, %v2537_v63  ;;  %vm2646_vm7 = vcmp.eq.s32.totalorder %v2587_v35, %v6278_v14  ;;  %v897_v63 = vrot.slane %v6227_v13, %v6334_v43 }
 0x27f   :  { %4757 = vmatprep.subr.msk.mxu0 %vm2672_vm8, %v2524_v16  ;;  %vm2645_vm8 = vcmp.eq.s32.totalorder %v2583_v47, %v6278_v14  ;;  %v2595_v16 = vrot.slane %v6235_v58, %v6337_v49  ;;  %v901_v28 = vrot.slane %v6227_v13, %v6337_v49 }
 0x280   :  { %4758 = vmatpush1.msk.msra.mxu0 %vm2671_vm9, %v2523_v29  ;;  %v6347_v29 = vrot.slane %v6235_v58, %v6334_v43 }
 0x281   :  { %4759 = vmatprep.subr.msk.mxu0 %vm2658_vm10, %v2510_v40  ;;  %vm2704_vm9 = vcmp.eq.s32.totalorder %v2595_v16, %v6217_v6 }
 0x282   :  { %4760 = vmatpush1.msk.msra.mxu0 %vm2657_vm11, %v2509_v56  ;;  %vm2703_vm10 = vcmp.eq.s32.totalorder %v6347_v29, %v6217_v6  ;;  %vm2690_vm11 = vcmp.eq.s32.totalorder %v2595_v16, %v6252_v27 }
 0x283   :  { %4761 = vmatprep.subr.msk.mxu0 %vm2644_vm12, %v2496_v48  ;;  %vm2689_vm12 = vcmp.eq.s32.totalorder %v6347_v29, %v6252_v27 }
 0x284   :  { %4762 = vmatpush1.msk.msra.mxu0 %vm2643_vm13, %v2495_v2  ;;  %vm2676_vm13 = vcmp.eq.s32.totalorder %v2595_v16, %v6246_v54 }
 0x285   :  { %4764 = vmatprep.subr.msk.mxu0 %vm2702_vm14, %v2554_v59  ;;  %4763 = vmatmul.mubr.msk.f32.vlgmr.msra.gmra.mxu0 %vm2784_vm15, %v6298_v7  ;;  %vm2675_vm14 = vcmp.eq.s32.totalorder %v6347_v29, %v6246_v54 }
 0x286   :  { %4765 = vmatpush1.msk.msra.mxu0 %vm2701_vm0, %v2553_v17  ;;  %2923 = vmatprep.mubr.f32.mxu0 %v5795_v36  ;;  %vm2662_vm0 = vcmp.eq.s32.totalorder %v2595_v16, %v6268_v50 }
 0x287   :  { %4766 = vmatprep.subr.msk.mxu0 %vm2688_vm1, %v2540_v18  ;;  %vm2661_vm1 = vcmp.eq.s32.totalorder %v6347_v29, %v6268_v50 }
 0x288   :  { %4767 = vmatpush1.msk.msra.mxu0 %vm2687_vm2, %v2539_v19  ;;  %vm2648_vm2 = vcmp.eq.s32.totalorder %v2595_v16, %v6278_v14 }
 0x289   :  { %4768 = vmatprep.subr.msk.mxu0 %vm2674_vm3, %v2526_v20  ;;  %vm2647_vm3 = vcmp.eq.s32.totalorder %v6347_v29, %v6278_v14  ;;  %v5631_v29 = vld [vmem:[#allocation4 + $0x38] sm:$0xff]  }
 0x28a   :  { %4769 = vmatpush1.msk.msra.mxu0 %vm2673_vm4, %v2525_v21  ;;  %v909_v21 = vrot.slane %v6227_v13, %v908_v5 }
 0x28b   :  { %4770 = vmatprep.subr.msk.mxu0 %vm2660_vm5, %v2512_v55 }
 0x28c   :  { %4771 = vmatpush1.msk.msra.mxu0 %vm2659_vm6, %v2511_v61 }
 0x28d   :  { %4772 = vmatprep.subr.msk.mxu0 %vm2646_vm7, %v2498_v22 }
 0x28e   :  { %4773 = vmatpush1.msk.msra.mxu0 %vm2645_vm8, %v2497_v57  ;;  %v6364_v57 = vrot.slane %v6235_v58, %v908_v5  ;;  %v5646_v5 = vld [vmem:[#allocation4 + $0x58] sm:$0xff]  }
 0x28f   :  { %4774 = vmatmul.mubr.msk.f32.vlgmr.msra.gmra.mxu0 %vm2784_vm15, %v6298_v7 }
 0x290   :  { %2994 = vmatprep.mubr.f32.mxu0 %v5795_v36  ;;  %vm2706_vm4 = vcmp.eq.s32.totalorder %v6364_v57, %v6217_v6  ;;  %vm2692_vm6 = vcmp.eq.s32.totalorder %v6364_v57, %v6252_v27  ;;  %vm2678_vm8 = vcmp.eq.s32.totalorder %v6364_v57, %v6246_v54 }
 0x2a1   :  { %v2224_v51 = vpop.f32.mrf.mxu1  ;;  %v6321_v32 = vpop.f32.mrf.mxu0 }
 0x2a2   :  { %v2225_v61 = vadd.f32 %v2224_v51, %v897_v63 }
 0x2a3   :  { %v2226_v24 = vpop.f32.mrf.mxu1  ;;  %v6323_v25 = vpop.f32.mrf.mxu0 }
 0x2a4   :  { %v2227_v3 = vadd.f32 %v2226_v24, %v901_v28 }
 0x2a5   :  { %v2228_v26 = vpop.f32.mrf.mxu1  ;;  %v6325_v52 = vpop.f32.mrf.mxu0 }
 0x2a6   :  { %v2229_v4 = vadd.f32 %v2228_v26, %v897_v63  ;;  %v6367_v26 = vrot.slane %v6235_v58, %v904_v60  ;;  %v2500_v51 = vmax.f32 %v2227_v3, 0.0  ;;  %v5638_v60 = vld [vmem:[#allocation4 + $0x68] sm:$0xff]  }
 0x2a7   :  { %v2230_v1 = vpop.f32.mrf.mxu1  ;;  %v6327_v9 = vpop.f32.mrf.mxu0 }
 0x2a8   :  { %v2231_v8 = vadd.f32 %v2230_v1, %v901_v28  ;;  %v2513_v13 = vmax.f32 %v2229_v4, 0.0  ;;  %vm2705_vm5 = vcmp.eq.s32.totalorder %v6367_v26, %v6217_v6  ;;  %vm2691_vm7 = vcmp.eq.s32.totalorder %v6367_v26, %v6252_v27 }
 0x2a9   :  { %v2234_v33 = vpop.f32.mrf.mxu1  ;;  %v6329_v37 = vpop.f32.mrf.mxu0 }
 0x2aa   :  { %v2235_v15 = vadd.f32 %v2234_v33, %v897_v63  ;;  %v2514_v1 = vmax.f32 %v2231_v8, 0.0  ;;  %v5659_v8 = vld [vmem:[#allocation4] sm:$0xff]  }
 0x2ab   :  { %v2236_v38 = vpop.f32.mrf.mxu1  ;;  %v6331_v39 = vpop.f32.mrf.mxu0 }
 0x2ac   :  { %v2237_v11 = vadd.f32 %v2236_v38, %v901_v28  ;;  %v2527_v22 = vmax.f32 %v2235_v15, 0.0  ;;  %v5651_v15 = vld [vmem:[#allocation4 + $0x10] sm:$0xff]  }
 0x2ad   :  { %v2238_v44 = vpop.f32.mrf.mxu1  ;;  %v2299_v45 = vpop.f32.mrf.mxu0 }
 0x2ae   :  { %v2239_v48 = vadd.f32 %v2238_v44, %v897_v63  ;;  %v2528_v55 = vmax.f32 %v2237_v11, 0.0  ;;  %v2499_v44 = vmax.f32 %v2225_v61, 0.0  ;;  %v2300_v58 = vadd.f32 %v2299_v45, %v905_v42  ;;  %v5647_v11 = vld [vmem:[#allocation4 + $0x18] sm:$0xff]  }
 0x2af   :  { %v2240_v23 = vpop.f32.mrf.mxu1  ;;  %v2301_v34 = vpop.f32.mrf.mxu0  ;;  %v2292_v45 = vadd.f32 %v6327_v9, %v909_v21 }
 0x2b0   :  { %v2241_v47 = vadd.f32 %v2240_v23, %v901_v28  ;;  %v2541_v20 = vmax.f32 %v2239_v48, 0.0  ;;  %v2302_v38 = vadd.f32 %v2301_v34, %v909_v21  ;;  %v2298_v23 = vadd.f32 %v6331_v39, %v909_v21  ;;  %v5639_v48 = vld [vmem:[#allocation4 + $0x28] sm:$0xff]  }
 0x2b1   :  { %v2244_v41 = vpop.f32.mrf.mxu1  ;;  %v2305_v0 = vpop.f32.mrf.mxu0  ;;  %v2290_v39 = vadd.f32 %v6325_v52, %v905_v42  ;;  %v2543_v16 = vmax.f32 %v2300_v58, 0.0  ;;  %v5634_v52 = vld [vmem:[#allocation4 + $0x70] sm:$0xff]   ;;  %v6426_v58 = vld [vmem:[%s6510_s8 + $0x8] sm:$0x3f] }
 0x2b2   :  { %v2245_v35 = vadd.f32 %v2244_v41, %v897_v63  ;;  %v2542_v19 = vmax.f32 %v2241_v47, 0.0  ;;  %v2306_v33 = vadd.f32 %v2305_v0, %v905_v42  ;;  %v2296_v41 = vadd.f32 %v6329_v37, %v905_v42  ;;  %v5635_v47 = vld [vmem:[#allocation4 + $0x30] sm:$0xff]  }
 0x2b3   :  { %v2246_v40 = vpop.f32.mrf.mxu1  ;;  %v2307_v46 = vpop.f32.mrf.mxu0  ;;  %v2544_v0 = vmax.f32 %v2302_v38, 0.0  ;;  %v2288_v37 = vadd.f32 %v6323_v25, %v909_v21  ;;  %v2530_v9 = vmax.f32 %v2298_v23, 0.0  ;;  %v2515_v25 = vmax.f32 %v2290_v39, 0.0 }
 0x2b4   :  { %v2247_v56 = vadd.f32 %v2246_v40, %v901_v28  ;;  %v2555_v17 = vmax.f32 %v2245_v35, 0.0  ;;  %v2308_v24 = vadd.f32 %v2307_v46, %v909_v21  ;;  %v2557_v34 = vmax.f32 %v2306_v33, 0.0  ;;  %v5630_v28 = vld [vmem:[#allocation4 + $0x78] sm:$0xff]  }
 0x2b5   :  { %v2248_v62 = vpop.f32.mrf.mxu1  ;;  %v2309_v2 = vpop.f32.mrf.mxu0  ;;  %v2286_v35 = vadd.f32 %v6321_v32, %v905_v42  ;;  %v2529_v40 = vmax.f32 %v2296_v41, 0.0  ;;  %v2516_v46 = vmax.f32 %v2292_v45, 0.0  ;;  %4985 = vmatprep.subr.bf16.mxu1 %v5630_v28  ;;  %v2502_v32 = vmax.f32 %v2288_v37, 0.0 }
 0x2b6   :  { %v2556_v59 = vmax.f32 %v2247_v56, 0.0  ;;  %v2558_v63 = vmax.f32 %v2308_v24, 0.0  ;;  %4986 = vmatpush3.bf16.msra.mxu1 %v5631_v29  ;;  %v5642_v62 = vld [vmem:[#allocation4 + $0x60] sm:$0xff]   ;;  %v2607_v28 = vrot.slane %v6426_v58, %v6220_v10 }
 0x2b7   :  { %v2249_v12 = vpop.f32.mrf.mxu1  ;;  %v2310_v18 = vpop.f32.mrf.mxu0  ;;  %4987 = vmatprep.subr.bf16.mxu1 %v5634_v52  ;;  %v2501_v56 = vmax.f32 %v2286_v35, 0.0  ;;  %v5643_v2 = vld [vmem:[#allocation4 + $0x20] sm:$0xff]  }
 0x2b8   :  { %4775 = vmatprep.subr.msk.mxu0 %vm2704_vm9, %v2556_v59  ;;  %vm2677_vm9 = vcmp.eq.s32.totalorder %v6367_v26, %v6246_v54  ;;  %v5650_v59 = vld [vmem:[#allocation4 + $0x50] sm:$0xff]   ;;  %v5655_v12 = vld [vmem:[#allocation4 + $0x8] sm:$0xff]   ;;  %v5658_v18 = vld [vmem:[#allocation4 + $0x40] sm:$0xff]  }
 0x2b9   :  { %4776 = vmatpush1.msk.msra.mxu0 %vm2703_vm10, %v2555_v17  ;;  %vm2664_vm10 = vcmp.eq.s32.totalorder %v6364_v57, %v6268_v50  ;;  %v5654_v17 = vld [vmem:[#allocation4 + $0x48] sm:$0xff]  }
 0x2ba   :  { %4777 = vmatprep.subr.msk.mxu0 %vm2690_vm11, %v2542_v19  ;;  %vm2663_vm11 = vcmp.eq.s32.totalorder %v6367_v26, %v6268_v50  ;;  %4988 = vmatpush3.bf16.msra.mxu1 %v5635_v47  ;;  %v5662_v19 = vld [vmem:[#allocation4 + $0x178] sm:$0xff]  }
 0x2bb   :  { %4778 = vmatpush1.msk.msra.mxu0 %vm2689_vm12, %v2541_v20  ;;  %vm2650_vm12 = vcmp.eq.s32.totalorder %v6364_v57, %v6278_v14  ;;  %4989 = vmatprep.subr.bf16.mxu1 %v5638_v60 }
 0x2bc   :  { %4779 = vmatprep.subr.msk.mxu0 %vm2676_vm13, %v2528_v55  ;;  %vm2649_vm13 = vcmp.eq.s32.totalorder %v6367_v26, %v6278_v14 }
 0x2bd   :  { %4780 = vmatpush1.msk.msra.mxu0 %vm2675_vm14, %v2527_v22 }
 0x2be   :  { %4781 = vmatprep.subr.msk.mxu0 %vm2662_vm0, %v2514_v1  ;;  %4990 = vmatpush3.bf16.msra.mxu1 %v5639_v48  ;;  %vm2707_vm0 = vcmp.eq.s32.totalorder %v2607_v28, %v6217_v6 }
 0x2bf   :  { %4782 = vmatpush1.msk.msra.mxu0 %vm2661_vm1, %v2513_v13  ;;  %4991 = vmatprep.subr.bf16.mxu1 %v5642_v62 }
 0x2c0   :  { %4783 = vmatprep.subr.msk.mxu0 %vm2648_vm2, %v2500_v51  ;;  %v6421_v51 = vld [vmem:[%s6505_s3 + $0x8] sm:$0x3f]  ;;  %vm2693_vm2 = vcmp.eq.s32.totalorder %v2607_v28, %v6252_v27 }
 0x2c1   :  { %4784 = vmatpush1.msk.msra.mxu0 %vm2647_vm3, %v2499_v44  ;;  %v913_v23 = vrot.slane %v6421_v51, %v6220_v10 }
 0x2c2   :  { %4786 = vmatprep.subr.msk.mxu0 %vm2706_vm4, %v2558_v63  ;;  %4785 = vmatmul.mubr.msk.f32.vlgmr.msra.gmra.mxu0 %vm2784_vm15, %v6298_v7  ;;  %vm2679_vm4 = vcmp.eq.s32.totalorder %v2607_v28, %v6246_v54 }
 0x2c3   :  { %4787 = vmatpush1.msk.msra.mxu0 %vm2705_vm5, %v2557_v34  ;;  %3065 = vmatprep.mubr.f32.mxu0 %v5795_v36  ;;  %v917_v34 = vrot.slane %v6421_v51, %v6230_v31 }
 0x2c4   :  { %4788 = vmatprep.subr.msk.mxu0 %vm2692_vm6, %v2544_v0  ;;  %4992 = vmatpush3.bf16.msra.mxu1 %v5643_v2  ;;  %v925_v2 = vrot.slane %v6421_v51, %v6260_v53  ;;  %vm2665_vm6 = vcmp.eq.s32.totalorder %v2607_v28, %v6268_v50 }
 0x2c5   :  { %4789 = vmatpush1.msk.msra.mxu0 %vm2691_vm7, %v2543_v16  ;;  %4993 = vmatprep.subr.bf16.mxu1 %v5646_v5  ;;  %v2611_v16 = vrot.slane %v6426_v58, %v6230_v31 }
 0x2c6   :  { %4790 = vmatprep.subr.msk.mxu0 %vm2678_vm8, %v2530_v9  ;;  %vm2651_vm8 = vcmp.eq.s32.totalorder %v2607_v28, %v6278_v14 }
 0x2c7   :  { %4791 = vmatpush1.msk.msra.mxu0 %vm2677_vm9, %v2529_v40  ;;  %vm2708_vm14 = vcmp.eq.s32.totalorder %v2611_v16, %v6217_v6  ;;  %vm2694_vm1 = vcmp.eq.s32.totalorder %v2611_v16, %v6252_v27  ;;  %vm2680_vm3 = vcmp.eq.s32.totalorder %v2611_v16, %v6246_v54  ;;  %vm2666_vm5 = vcmp.eq.s32.totalorder %v2611_v16, %v6268_v50 }
 0x2c8   :  { %4792 = vmatprep.subr.msk.mxu0 %vm2664_vm10, %v2516_v46  ;;  %4994 = vmatpush3.bf16.msra.mxu1 %v5647_v11  ;;  %vm2652_vm7 = vcmp.eq.s32.totalorder %v2611_v16, %v6278_v14 }
 0x2c9   :  { %4793 = vmatpush1.msk.msra.mxu0 %vm2663_vm11, %v2515_v25  ;;  %4995 = vmatprep.subr.bf16.mxu1 %v5650_v59  ;;  %v921_v59 = vrot.slane %v6421_v51, %v6255_v30 }
 0x2ca   :  { %4794 = vmatprep.subr.msk.mxu0 %vm2650_vm12, %v2502_v32 }
 0x2cb   :  { %4795 = vmatpush1.msk.msra.mxu0 %vm2649_vm13, %v2501_v56 }
 0x2cc   :  { %4796 = vmatmul.mubr.msk.f32.vlgmr.msra.gmra.mxu0 %vm2784_vm15, %v6298_v7  ;;  %4996 = vmatpush3.bf16.msra.mxu1 %v5651_v15 }
 0x2cd   :  { %3136 = vmatprep.mubr.f32.mxu0 %v5795_v36  ;;  %4997 = vmatprep.subr.bf16.mxu1 %v5654_v17 }
 0x2d0   :  { %4998 = vmatpush3.bf16.msra.mxu1 %v5655_v12 }
 0x2d1   :  { %4999 = vmatprep.subr.bf16.mxu1 %v5658_v18 }
 0x2d4   :  { %5000 = vmatpush3.bf16.msra.mxu1 %v5659_v8 }
 0x2d5   :  { %5029 = vmatprep.subr.bf16.mxu1 %v5662_v19  ;;  %v2619_v19 = vrot.slane %v6426_v58, %v6260_v53 }
 0x2d7   :  { %vm2710_vm9 = vcmp.eq.s32.totalorder %v2619_v19, %v6217_v6  ;;  %vm2696_vm11 = vcmp.eq.s32.totalorder %v2619_v19, %v6252_v27  ;;  %vm2682_vm13 = vcmp.eq.s32.totalorder %v2619_v19, %v6246_v54 }
 0x2e2   :  { %v2346_v42 = vpop.f32.mrf.mxu1  ;;  %v6406_v4 = vpop.f32.mrf.mxu0 }
 0x2e3   :  { %v2347_v11 = vadd.f32 %v2346_v42, %v913_v23 }
 0x2e4   :  { %v2348_v20 = vpop.f32.mrf.mxu1  ;;  %v6408_v3 = vpop.f32.mrf.mxu0 }
 0x2e5   :  { %v2349_v10 = vadd.f32 %v2348_v20, %v917_v34 }
 0x2e6   :  { %v2350_v21 = vpop.f32.mrf.mxu1  ;;  %v6410_v55 = vpop.f32.mrf.mxu0 }
 0x2e7   :  { %v2351_v31 = vadd.f32 %v2350_v21, %v913_v23  ;;  %v2504_v42 = vmax.f32 %v2349_v10, 0.0  ;;  %v2615_v21 = vrot.slane %v6426_v58, %v6255_v30 }
 0x2e8   :  { %v2352_v61 = vpop.f32.mrf.mxu1  ;;  %v6412_v22 = vpop.f32.mrf.mxu0 }
 0x2e9   :  { %v2353_v60 = vadd.f32 %v2352_v61, %v917_v34  ;;  %v2517_v18 = vmax.f32 %v2351_v31, 0.0  ;;  %v2503_v61 = vmax.f32 %v2347_v11, 0.0  ;;  %vm2709_vm10 = vcmp.eq.s32.totalorder %v2615_v21, %v6217_v6 }
 0x2ea   :  { %v2356_v57 = vpop.f32.mrf.mxu1  ;;  %v6414_v26 = vpop.f32.mrf.mxu0  ;;  %vm2695_vm12 = vcmp.eq.s32.totalorder %v2615_v21, %v6252_v27 }
 0x2eb   :  { %v2357_v25 = vadd.f32 %v2356_v57, %v913_v23  ;;  %v2518_v17 = vmax.f32 %v2353_v60, 0.0  ;;  %v2418_v53 = vadd.f32 %v6414_v26, %v921_v59  ;;  %v2410_v26 = vadd.f32 %v6408_v3, %v925_v2 }
 0x2ec   :  { %v2358_v1 = vpop.f32.mrf.mxu1  ;;  %v6416_v24 = vpop.f32.mrf.mxu0 }
 0x2ed   :  { %v2359_v52 = vadd.f32 %v2358_v1, %v917_v34  ;;  %v2531_v15 = vmax.f32 %v2357_v25, 0.0  ;;  %v2420_v1 = vadd.f32 %v6416_v24, %v925_v2  ;;  %v2412_v24 = vadd.f32 %v6410_v55, %v921_v59 }
 0x2ee   :  { %v2360_v13 = vpop.f32.mrf.mxu1  ;;  %v2421_v33 = vpop.f32.mrf.mxu0 }
 0x2ef   :  { %v2361_v29 = vadd.f32 %v2360_v13, %v913_v23  ;;  %v2532_v5 = vmax.f32 %v2359_v52, 0.0  ;;  %v2422_v57 = vadd.f32 %v2421_v33, %v921_v59  ;;  %v2519_v55 = vmax.f32 %v2412_v24, 0.0  ;;  %v5671_v24 = vld [vmem:[#allocation4 + $0x128] sm:$0xff]  }
 0x2f0   :  { %v2362_v38 = vpop.f32.mrf.mxu1  ;;  %v2423_v44 = vpop.f32.mrf.mxu0 }
 0x2f1   :  { %v2363_v37 = vadd.f32 %v2362_v38, %v917_v34  ;;  %v2545_v62 = vmax.f32 %v2361_v29, 0.0  ;;  %v2424_v20 = vadd.f32 %v2423_v44, %v925_v2  ;;  %v2414_v44 = vadd.f32 %v6412_v22, %v925_v2 }
 0x2f2   :  { %v2366_v63 = vpop.f32.mrf.mxu1  ;;  %v2427_v41 = vpop.f32.mrf.mxu0  ;;  %v2547_v33 = vmax.f32 %v2422_v57, 0.0  ;;  %v2408_v22 = vadd.f32 %v6406_v4, %v921_v59  ;;  %v929_v29 = vrot.slane %v6421_v51, %v6334_v43  ;;  %v5663_v57 = vld [vmem:[#allocation4 + $0x138] sm:$0xff]  }
 0x2f3   :  { %v2367_v45 = vadd.f32 %v2366_v63, %v913_v23  ;;  %v2546_v48 = vmax.f32 %v2363_v37, 0.0  ;;  %v2428_v8 = vadd.f32 %v2427_v41, %v921_v59  ;;  %v2548_v30 = vmax.f32 %v2424_v20, 0.0 }
 0x2f4   :  { %v2368_v0 = vpop.f32.mrf.mxu1  ;;  %v2429_v39 = vpop.f32.mrf.mxu0  ;;  %v2534_v23 = vmax.f32 %v2420_v1, 0.0  ;;  %v2533_v63 = vmax.f32 %v2418_v53, 0.0  ;;  %v2520_v41 = vmax.f32 %v2414_v44, 0.0  ;;  %v2505_v3 = vmax.f32 %v2408_v22, 0.0  ;;  %v5641_v1 = vld [vmem:[#allocation4 + $0xa8] sm:$0xff]   ;;  %v5667_v53 = vld [vmem:[#allocation4 + $0x130] sm:$0xff]  }
 0x2f5   :  { %v2369_v9 = vadd.f32 %v2368_v0, %v917_v34  ;;  %v2559_v47 = vmax.f32 %v2367_v45, 0.0  ;;  %v2430_v12 = vadd.f32 %v2429_v39, %v925_v2  ;;  %v2561_v38 = vmax.f32 %v2428_v8, 0.0  ;;  %v5648_v44 = vld [vmem:[#allocation4 + $0xd8] sm:$0xff]   ;;  %v5652_v22 = vld [vmem:[#allocation4 + $0xd0] sm:$0xff]  }
 0x2f6   :  { %v2370_v35 = vpop.f32.mrf.mxu1  ;;  %v2431_v40 = vpop.f32.mrf.mxu0  ;;  %v2506_v34 = vmax.f32 %v2410_v26, 0.0 }
 0x2f7   :  { %v2560_v46 = vmax.f32 %v2369_v9, 0.0  ;;  %v2562_v13 = vmax.f32 %v2430_v12, 0.0  ;;  %v933_v40 = vrot.slane %v6421_v51, %v6337_v49 }
 0x2f8   :  { %v2371_v32 = vpop.f32.mrf.mxu1  ;;  %v2432_v56 = vpop.f32.mrf.mxu0 }
 0x2f9   :  { %4797 = vmatprep.subr.msk.mxu0 %vm2708_vm14, %v2560_v46  ;;  %vm2681_vm14 = vcmp.eq.s32.totalorder %v2615_v21, %v6246_v54  ;;  %v2623_v32 = vrot.slane %v6426_v58, %v6334_v43 }
 0x2fa   :  { %4798 = vmatpush1.msk.msra.mxu0 %vm2707_vm0, %v2559_v47  ;;  %vm2668_vm0 = vcmp.eq.s32.totalorder %v2619_v19, %v6268_v50 }
 0x2fb   :  { %4799 = vmatprep.subr.msk.mxu0 %vm2694_vm1, %v2546_v48  ;;  %vm2667_vm1 = vcmp.eq.s32.totalorder %v2615_v21, %v6268_v50 }
 0x2fc   :  { %4800 = vmatpush1.msk.msra.mxu0 %vm2693_vm2, %v2545_v62  ;;  %vm2654_vm2 = vcmp.eq.s32.totalorder %v2619_v19, %v6278_v14  ;;  %v5636_v19 = vld [vmem:[#allocation4 + $0xf0] sm:$0xff]  }
 0x2fd   :  { %4801 = vmatprep.subr.msk.mxu0 %vm2680_vm3, %v2532_v5  ;;  %vm2653_vm3 = vcmp.eq.s32.totalorder %v2615_v21, %v6278_v14 }
 0x2fe   :  { %4802 = vmatpush1.msk.msra.mxu0 %vm2679_vm4, %v2531_v15 }
 0x2ff   :  { %4803 = vmatprep.subr.msk.mxu0 %vm2666_vm5, %v2518_v17  ;;  %vm2711_vm5 = vcmp.eq.s32.totalorder %v2623_v32, %v6217_v6 }
 0x300   :  { %4804 = vmatpush1.msk.msra.mxu0 %vm2665_vm6, %v2517_v18  ;;  %v5632_v18 = vld [vmem:[#allocation4 + $0xf8] sm:$0xff]  }
 0x301   :  { %4805 = vmatprep.subr.msk.mxu0 %vm2652_vm7, %v2504_v42  ;;  %vm2697_vm7 = vcmp.eq.s32.totalorder %v2623_v32, %v6252_v27 }
 0x302   :  { %4806 = vmatpush1.msk.msra.mxu0 %vm2651_vm8, %v2503_v61 }
 0x303   :  { %4807 = vmatmul.mubr.msk.f32.vlgmr.msra.gmra.mxu0 %vm2784_vm15, %v6298_v7  ;;  %4808 = vmatprep.subr.msk.mxu0 %vm2710_vm9, %v2562_v13  ;;  %vm2683_vm9 = vcmp.eq.s32.totalorder %v2623_v32, %v6246_v54  ;;  %v5666_v13 = vld [vmem:[#allocation4 + $0x170] sm:$0xff]  }
 0x304   :  { %4809 = vmatpush1.msk.msra.mxu0 %vm2709_vm10, %v2561_v38  ;;  %3207 = vmatprep.mubr.f32.mxu0 %v5795_v36  ;;  %v5670_v38 = vld [vmem:[#allocation4 + $0x168] sm:$0xff]  }
 0x305   :  { %4810 = vmatprep.subr.msk.mxu0 %vm2696_vm11, %v2548_v30  ;;  %vm2669_vm11 = vcmp.eq.s32.totalorder %v2623_v32, %v6268_v50 }
 0x306   :  { %4811 = vmatpush1.msk.msra.mxu0 %vm2695_vm12, %v2547_v33  ;;  %v5649_v33 = vld [vmem:[#allocation4 + $0x98] sm:$0xff]  }
 0x307   :  { %4812 = vmatprep.subr.msk.mxu0 %vm2682_vm13, %v2534_v23  ;;  %vm2655_vm13 = vcmp.eq.s32.totalorder %v2623_v32, %v6278_v14  ;;  %v5674_v23 = vld [vmem:[#allocation4 + $0x160] sm:$0xff]   ;;  %v5672_v32 = vld [vmem:[#allocation4 + $0x1e8] sm:$0xff]  }
 0x308   :  { %4813 = vmatpush1.msk.msra.mxu0 %vm2681_vm14, %v2533_v63 }
 0x309   :  { %4814 = vmatprep.subr.msk.mxu0 %vm2668_vm0, %v2520_v41  ;;  %v5675_v41 = vld [vmem:[#allocation4 + $0x120] sm:$0xff]  }
 0x30a   :  { %4815 = vmatpush1.msk.msra.mxu0 %vm2667_vm1, %v2519_v55  ;;  %v5653_v55 = vld [vmem:[#allocation4 + $0x90] sm:$0xff]  }
 0x30b   :  { %4816 = vmatprep.subr.msk.mxu0 %vm2654_vm2, %v2506_v34  ;;  %v5678_v34 = vld [vmem:[#allocation4 + $0x158] sm:$0xff]  }
 0x30c   :  { %4817 = vmatpush1.msk.msra.mxu0 %vm2653_vm3, %v2505_v3  ;;  %v5656_v3 = vld [vmem:[#allocation4 + $0xc8] sm:$0xff]  }
 0x30d   :  { %4818 = vmatmul.mubr.msk.f32.vlgmr.msra.gmra.mxu0 %vm2784_vm15, %v6298_v7 }
 0x30e   :  { %3278 = vmatprep.mubr.f32.mxu0 %v5795_v36  ;;  %v2627_v36 = vrot.slane %v6426_v58, %v6337_v49 }
 0x310   :  { %vm2712_vm4 = vcmp.eq.s32.totalorder %v2627_v36, %v6217_v6  ;;  %vm2698_vm6 = vcmp.eq.s32.totalorder %v2627_v36, %v6252_v27  ;;  %vm2684_vm8 = vcmp.eq.s32.totalorder %v2627_v36, %v6246_v54  ;;  %vm2670_vm10 = vcmp.eq.s32.totalorder %v2627_v36, %v6268_v50  ;;  %v5633_v27 = vld [vmem:[#allocation4 + $0xb8] sm:$0xff]   ;;  %v5637_v54 = vld [vmem:[#allocation4 + $0xb0] sm:$0xff]   ;;  %v5640_v50 = vld [vmem:[#allocation4 + $0xe8] sm:$0xff]  }
 0x311   :  { %vm2656_vm12 = vcmp.eq.s32.totalorder %v2627_v36, %v6278_v14  ;;  %v5644_v14 = vld [vmem:[#allocation4 + $0xe0] sm:$0xff]  }
 0x312   :  { %v5691_v36 = vld [vmem:[#allocation4 + $0x100] sm:$0xff]  }
 0x323   :  { %v2468_v4 = vpop.f32.mrf.mxu1 }
 0x324   :  { %v2469_v59 = vadd.f32 %v2468_v4, %v929_v29  ;;  %v5679_v4 = vld [vmem:[#allocation4 + $0x118] sm:$0xff]  }
 0x325   :  { %v2470_v45 = vpop.f32.mrf.mxu1 }
 0x326   :  { %v2471_v43 = vadd.f32 %v2470_v45, %v933_v40  ;;  %v2507_v8 = vmax.f32 %v2469_v59, 0.0  ;;  %v5657_v45 = vld [vmem:[#allocation4 + $0x88] sm:$0xff]  }
 0x327   :  { %v2472_v0 = vpop.f32.mrf.mxu1 }
 0x328   :  { %v2473_v49 = vadd.f32 %v2472_v0, %v929_v29  ;;  %v2508_v12 = vmax.f32 %v2471_v43, 0.0  ;;  %v5682_v0 = vld [vmem:[#allocation4 + $0x150] sm:$0xff]   ;;  %v5700_v43 = vld [vmem:[#allocation4 + $0x2f8] sm:$0xff]  }
 0x329   :  { %v2474_v39 = vpop.f32.mrf.mxu1 }
 0x32a   :  { %v2475_v51 = vadd.f32 %v2474_v39, %v933_v40  ;;  %v2521_v6 = vmax.f32 %v2473_v49, 0.0  ;;  %v5660_v39 = vld [vmem:[#allocation4 + $0xc0] sm:$0xff]  }
 0x32b   :  { %v2478_v16 = vpop.f32.mrf.mxu1  ;;  %v5692_v49 = vld [vmem:[#allocation4 + $0x1c0] sm:$0xff]  }
 0x32c   :  { %v2479_v62 = vadd.f32 %v2478_v16, %v929_v29  ;;  %v2522_v17 = vmax.f32 %v2475_v51, 0.0  ;;  %v5683_v16 = vld [vmem:[#allocation4 + $0x110] sm:$0xff]   ;;  %v5688_v51 = vld [vmem:[#allocation4 + $0x1c8] sm:$0xff]  }
 0x32d   :  { %v2480_v37 = vpop.f32.mrf.mxu1 }
 0x32e   :  { %v2481_v48 = vadd.f32 %v2480_v37, %v933_v40  ;;  %v2535_v15 = vmax.f32 %v2479_v62, 0.0  ;;  %v5661_v37 = vld [vmem:[#allocation4 + $0x80] sm:$0xff]   ;;  %v5681_v62 = vld [vmem:[#allocation4 + $0x198] sm:$0xff]  }
 0x32f   :  { %v2482_v9 = vpop.f32.mrf.mxu1 }
 0x330   :  { %v2483_v56 = vadd.f32 %v2482_v9, %v929_v29  ;;  %v2536_v58 = vmax.f32 %v2481_v48, 0.0  ;;  %v5686_v9 = vld [vmem:[#allocation4 + $0x148] sm:$0xff]   ;;  %v5677_v48 = vld [vmem:[#allocation4 + $0x1a0] sm:$0xff]  }
 0x331   :  { %v2484_v28 = vpop.f32.mrf.mxu1 }
 0x332   :  { %v2485_v25 = vadd.f32 %v2484_v28, %v933_v40  ;;  %v2549_v11 = vmax.f32 %v2483_v56, 0.0  ;;  %v5664_v28 = vld [vmem:[#allocation4 + $0x1f8] sm:$0xff]   ;;  %v5673_v56 = vld [vmem:[#allocation4 + $0x1a8] sm:$0xff]  }
 0x333   :  { %v2488_v35 = vpop.f32.mrf.mxu1 }
 0x334   :  { %v2489_v52 = vadd.f32 %v2488_v35, %v929_v29  ;;  %v2550_v5 = vmax.f32 %v2485_v25, 0.0  ;;  %v5687_v35 = vld [vmem:[#allocation4 + $0x108] sm:$0xff]   ;;  %v5669_v25 = vld [vmem:[#allocation4 + $0x1b0] sm:$0xff]  }
 0x335   :  { %v2490_v46 = vpop.f32.mrf.mxu1 }
 0x336   :  { %v2491_v47 = vadd.f32 %v2490_v46, %v933_v40  ;;  %v2563_v10 = vmax.f32 %v2489_v52, 0.0  ;;  %v5665_v40 = vld [vmem:[#allocation4 + $0x1b8] sm:$0xff]   ;;  %v5690_v52 = vld [vmem:[#allocation4 + $0x140] sm:$0xff]   ;;  %v5668_v46 = vld [vmem:[#allocation4 + $0x1f0] sm:$0xff]  }
 0x337   :  { %v2492_v60 = vpop.f32.mrf.mxu1 }
 0x338   :  { %v2564_v31 = vmax.f32 %v2491_v47, 0.0  ;;  %v5694_v47 = vld [vmem:[#allocation4 + $0x278] sm:$0xff]   ;;  %v5676_v60 = vld [vmem:[#allocation4 + $0x1e0] sm:$0xff]  }
 0x339   :  { %v2493_v2 = vpop.f32.mrf.mxu1 }
 0x33a   :  { %4819 = vmatprep.subr.msk.mxu0 %vm2712_vm4, %v2564_v31  ;;  %v5680_v31 = vld [vmem:[#allocation4 + $0x1d8] sm:$0xff]   ;;  %v5685_v2 = vld [vmem:[#allocation4 + $0x190] sm:$0xff]  }
 0x33b   :  { %4820 = vmatpush1.msk.msra.mxu0 %vm2711_vm5, %v2563_v10  ;;  %v5684_v10 = vld [vmem:[#allocation4 + $0x1d0] sm:$0xff]  }
 0x33c   :  { %4821 = vmatprep.subr.msk.mxu0 %vm2698_vm6, %v2550_v5  ;;  %v5689_v5 = vld [vmem:[#allocation4 + $0x188] sm:$0xff]  }
 0x33d   :  { %4822 = vmatpush1.msk.msra.mxu0 %vm2697_vm7, %v2549_v11  ;;  %v5693_v11 = vld [vmem:[#allocation4 + $0x180] sm:$0xff]  }
 0x33e   :  { %4823 = vmatprep.subr.msk.mxu0 %vm2684_vm8, %v2536_v58 }
 0x33f   :  { %4824 = vmatpush1.msk.msra.mxu0 %vm2683_vm9, %v2535_v15 }
 0x340   :  { %4825 = vmatprep.subr.msk.mxu0 %vm2670_vm10, %v2522_v17 }
 0x341   :  { %4826 = vmatpush1.msk.msra.mxu0 %vm2669_vm11, %v2521_v6  ;;  %v5695_v6 = vld [vmem:[#allocation4 + $0x238] sm:$0xff]  }
 0x342   :  { %4827 = vmatprep.subr.msk.mxu0 %vm2656_vm12, %v2508_v12  ;;  %v5696_v12 = vld [vmem:[#allocation4 + $0x270] sm:$0xff]  }
 0x343   :  { %4828 = vmatpush1.msk.msra.mxu0 %vm2655_vm13, %v2507_v8  ;;  %v5698_v8 = vld [vmem:[#allocation4 + $0x268] sm:$0xff]  }
 0x344   :  { %4829 = vmatmul.mubr.msk.f32.vlgmr.msra.gmra.mxu0 %vm2784_vm15, %v6298_v7  ;;  %5007 = vmatprep.subr.bf16.mxu0 %v5632_v18  ;;  %v5645_v7 = vld [vmem:[#allocation4 + $0xa0] sm:$0xff]   ;;  %v5697_v18 = vld [vmem:[#allocation4 + $0x230] sm:$0xff]  }
 0x345   :  { %5008 = vmatpush3.bf16.msra.mxu0 %v5633_v27  ;;  %v2854_v42 = vpop.f32.mrf.mxu0 }
 0x346   :  { %5009 = vmatprep.subr.bf16.mxu0 %v5636_v19  ;;  %v3285_v20 = vpack.c.bf16 %v2854_v42, %v2854_v42  ;;  %v5699_v19 = vld [vmem:[#allocation4 + $0x228] sm:$0xff]  }
 0x347   :  { %v2856_v21 = vpop.f32.mrf.mxu0 }
 0x348   :  { %v3286_v61 = vpack.c.bf16 %v2856_v21, %v2856_v21  ;;  %v5701_v21 = vld [vmem:[#allocation4 + $0x2b8] sm:$0xff]  }
 0x349   :  { %5010 = vmatpush3.bf16.msra.mxu0 %v5637_v54 }
 0x34a   :  { %5011 = vmatprep.subr.bf16.mxu0 %v5640_v50  ;;  %4234 = vmatprep.mubr.bf16.mxu1 %v3286_v61  ;;  %v5702_v50 = vld [vmem:[#allocation4 + $0x260] sm:$0xff]   ;;  %v5704_v61 = vld [vmem:[#allocation4 + $0x2f0] sm:$0xff]  }
 0x34b   :  { %4235 = vmatmul.mubr.bf16.vlgmr.msra.gmra.mxu1 %v3285_v20 }
 0x34c   :  { %5030 = vmatpush3.bf16.msra.mxu1 %v5663_v57  ;;  %v5703_v57 = vld [vmem:[#allocation4 + $0x220] sm:$0xff]  }
 0x34d   :  { %5012 = vmatpush3.bf16.msra.mxu0 %v5641_v1  ;;  %5031 = vmatprep.subr.bf16.mxu1 %v5666_v13  ;;  %v5706_v1 = vld [vmem:[#allocation4 + $0x258] sm:$0xff]   ;;  %v5705_v13 = vld [vmem:[#allocation4 + $0x2b0] sm:$0xff]  }
 0x34e   :  { %5013 = vmatprep.subr.bf16.mxu0 %v5644_v14  ;;  %v5708_v14 = vld [vmem:[#allocation4 + $0x2e8] sm:$0xff]  }
 0x34f   :  { %v2925_v30 = vpop.f32.mrf.mxu0 }
 0x350   :  { %5032 = vmatpush3.bf16.msra.mxu1 %v5667_v53  ;;  %v3287_v29 = vpack.c.bf16 %v2925_v30, %v2925_v30  ;;  %v5707_v53 = vld [vmem:[#allocation4 + $0x218] sm:$0xff]   ;;  %v5711_v30 = vld [vmem:[#allocation4 + $0x210] sm:$0xff]  }
 0x351   :  { %5014 = vmatpush3.bf16.msra.mxu0 %v5645_v7  ;;  %v2927_v26 = vpop.f32.mrf.mxu0  ;;  %5033 = vmatprep.subr.bf16.mxu1 %v5670_v38  ;;  %v5710_v7 = vld [vmem:[#allocation4 + $0x250] sm:$0xff]   ;;  %v5709_v38 = vld [vmem:[#allocation4 + $0x2a8] sm:$0xff]  }
 0x352   :  { %5015 = vmatprep.subr.bf16.mxu0 %v5648_v44  ;;  %v3288_v63 = vpack.c.bf16 %v2927_v26, %v2927_v26  ;;  %v5712_v44 = vld [vmem:[#allocation4 + $0x2e0] sm:$0xff]   ;;  %v5716_v26 = vld [vmem:[#allocation4 + $0x2d8] sm:$0xff]  }
 0x354   :  { %4274 = vmatprep.mubr.bf16.mxu0 %v3288_v63  ;;  %5034 = vmatpush3.bf16.msra.mxu1 %v5671_v24  ;;  %v5714_v24 = vld [vmem:[#allocation4 + $0x248] sm:$0xff]   ;;  %v5717_v63 = vld [vmem:[#allocation4 + $0x298] sm:$0xff]  }
 0x355   :  { %5016 = vmatpush3.bf16.msra.mxu0 %v5649_v33  ;;  %5035 = vmatprep.subr.bf16.mxu1 %v5674_v23  ;;  %v5713_v33 = vld [vmem:[#allocation4 + $0x2a0] sm:$0xff]   ;;  %v5715_v23 = vld [vmem:[#allocation4 + $0x208] sm:$0xff]  }
 0x356   :  { %5017 = vmatprep.subr.bf16.mxu0 %v5652_v22  ;;  %v5718_v22 = vld [vmem:[#allocation4 + $0x240] sm:$0xff]  }
 0x358   :  { %5036 = vmatpush3.bf16.msra.mxu1 %v5675_v41  ;;  %v5720_v41 = vld [vmem:[#allocation4 + $0x2d0] sm:$0xff]  }
 0x359   :  { %5018 = vmatpush3.bf16.msra.mxu0 %v5653_v55  ;;  %5037 = vmatprep.subr.bf16.mxu1 %v5678_v34  ;;  %v5719_v55 = vld [vmem:[#allocation4 + $0x200] sm:$0xff]   ;;  %v5726_v34 = vld [vmem:[#allocation4 + $0x378] sm:$0xff]  }
 0x35a   :  { %5019 = vmatprep.subr.bf16.mxu0 %v5656_v3  ;;  %v5721_v3 = vld [vmem:[#allocation4 + $0x290] sm:$0xff]  }
 0x35c   :  { %5038 = vmatpush3.bf16.msra.mxu1 %v5679_v4  ;;  %v5722_v4 = vld [vmem:[#allocation4 + $0x2c8] sm:$0xff]  }
 0x35d   :  { %5020 = vmatpush3.bf16.msra.mxu0 %v5657_v45  ;;  %5039 = vmatprep.subr.bf16.mxu1 %v5682_v0  ;;  %v5723_v45 = vld [vmem:[#allocation4 + $0x288] sm:$0xff]   ;;  %v5724_v0 = vld [vmem:[#allocation4 + $0x2c0] sm:$0xff]  }
 0x35e   :  { %5021 = vmatprep.subr.bf16.mxu0 %v5660_v39  ;;  %v5725_v39 = vld [vmem:[#allocation4 + $0x280] sm:$0xff]  }
 0x360   :  { %5040 = vmatpush3.bf16.msra.mxu1 %v5683_v16 }
 0x361   :  { %5022 = vmatpush3.bf16.msra.mxu0 %v5661_v37  ;;  %5041 = vmatprep.subr.bf16.mxu1 %v5686_v9 }
 0x362   :  { %5051 = vmatprep.subr.bf16.mxu0 %v5664_v28 }
 0x364   :  { %4275 = vmatmul.mubr.bf16.vlgmr.msra.gmra.mxu0 %v3287_v29  ;;  %5042 = vmatpush3.bf16.msra.mxu1 %v5687_v35  ;;  %v5727_v29 = vld [vmem:[#allocation4 + $0x338] sm:$0xff]   ;;  %v5728_v35 = vld [vmem:[#allocation4 + $0x370] sm:$0xff]  }
 0x365   :  { %5052 = vmatpush3.bf16.msra.mxu0 %v5665_v40  ;;  %5043 = vmatprep.subr.bf16.mxu1 %v5690_v52  ;;  %v5729_v40 = vld [vmem:[#allocation4 + $0x330] sm:$0xff]   ;;  %v5730_v52 = vld [vmem:[#allocation4 + $0x368] sm:$0xff]  }
 0x366   :  { %5053 = vmatprep.subr.bf16.mxu0 %v5668_v46 }
 0x368   :  { %5044 = vmatpush3.bf16.msra.mxu1 %v5691_v36  ;;  %v5731_v36 = vld [vmem:[#allocation4 + $0x328] sm:$0xff]  }
 0x369   :  { %5054 = vmatpush3.bf16.msra.mxu0 %v5669_v25  ;;  %5073 = vmatprep.subr.bf16.mxu1 %v5694_v47 }
 0x36a   :  { %5055 = vmatprep.subr.bf16.mxu0 %v5672_v32  ;;  %v5732_v32 = vld [vmem:[#allocation4 + $0x360] sm:$0xff]  }
 0x36d   :  { %5056 = vmatpush3.bf16.msra.mxu0 %v5673_v56 }
 0x36e   :  { %5057 = vmatprep.subr.bf16.mxu0 %v5676_v60  ;;  %v5733_v60 = vld [vmem:[#allocation4 + $0x320] sm:$0xff]  }
 0x371   :  { %5058 = vmatpush3.bf16.msra.mxu0 %v5677_v48  ;;  %v5734_v48 = vld [vmem:[#allocation4 + $0x358] sm:$0xff]  }
 0x372   :  { %5059 = vmatprep.subr.bf16.mxu0 %v5680_v31  ;;  %v5735_v31 = vld [vmem:[#allocation4 + $0x318] sm:$0xff]  }
 0x375   :  { %5060 = vmatpush3.bf16.msra.mxu0 %v5681_v62  ;;  %v5736_v62 = vld [vmem:[#allocation4 + $0x350] sm:$0xff]  }
 0x376   :  { %5061 = vmatprep.subr.bf16.mxu0 %v5684_v10  ;;  %v5737_v10 = vld [vmem:[#allocation4 + $0x310] sm:$0xff]  }
 0x379   :  { %5062 = vmatpush3.bf16.msra.mxu0 %v5685_v2  ;;  %v5738_v2 = vld [vmem:[#allocation4 + $0x348] sm:$0xff]  }
 0x37a   :  { %5063 = vmatprep.subr.bf16.mxu0 %v5688_v51  ;;  %v5739_v51 = vld [vmem:[#allocation4 + $0x308] sm:$0xff]  }
 0x37d   :  { %5064 = vmatpush3.bf16.msra.mxu0 %v5689_v5  ;;  %v5740_v5 = vld [vmem:[#allocation4 + $0x340] sm:$0xff]  }
 0x37e   :  { %5065 = vmatprep.subr.bf16.mxu0 %v5692_v49  ;;  %v5741_v49 = vld [vmem:[#allocation4 + $0x300] sm:$0xff]  }
 0x381   :  { %5066 = vmatpush3.bf16.msra.mxu0 %v5693_v11 }
 0x382   :  { %v2996_v58 = vpop.f32.mrf.mxu0  ;;  %5095 = vmatprep.subr.bf16.mxu0 %v5700_v43 }
 0x383   :  { %v3289_v59 = vpack.c.bf16 %v2996_v58, %v2996_v58 }
 0x384   :  { %v2998_v15 = vpop.f32.mrf.mxu0 }
 0x385   :  { %v3290_v17 = vpack.c.bf16 %v2998_v15, %v2998_v15 }
 0x387   :  { %4314 = vmatprep.mubr.bf16.mxu1 %v3290_v17 }
 0x388   :  { %4315 = vmatmul.mubr.bf16.vlgmr.msra.gmra.mxu1 %v3289_v59 }
 0x389   :  { %5074 = vmatpush3.bf16.msra.mxu1 %v5695_v6 }
 0x38a   :  { %5075 = vmatprep.subr.bf16.mxu1 %v5696_v12 }
 0x38c   :  { %v3067_v27 = vpop.f32.mrf.mxu0 }
 0x38d   :  { %5076 = vmatpush3.bf16.msra.mxu1 %v5697_v18  ;;  %v3291_v54 = vpack.c.bf16 %v3067_v27, %v3067_v27 }
 0x38e   :  { %v3069_v42 = vpop.f32.mrf.mxu0  ;;  %5077 = vmatprep.subr.bf16.mxu1 %v5698_v8  ;;  %v4830_v8 = vld [vmem:[%s6507_s5] ss:$0 sm:$0xff] }
 0x38f   :  { %v3292_v20 = vpack.c.bf16 %v3069_v42, %v3069_v42 }
 0x391   :  { %4354 = vmatprep.mubr.bf16.mxu0 %v3292_v20  ;;  %5078 = vmatpush3.bf16.msra.mxu1 %v5699_v19 }
 0x392   :  { %4355 = vmatmul.mubr.bf16.vlgmr.msra.gmra.mxu0 %v3291_v54  ;;  %5079 = vmatprep.subr.bf16.mxu1 %v5702_v50 }
 0x393   :  { %5096 = vmatpush3.bf16.msra.mxu0 %v5701_v21 }
 0x394   :  { %5097 = vmatprep.subr.bf16.mxu0 %v5704_v61 }
 0x395   :  { %5080 = vmatpush3.bf16.msra.mxu1 %v5703_v57 }
 0x396   :  { %5081 = vmatprep.subr.bf16.mxu1 %v5706_v1 }
 0x397   :  { %5098 = vmatpush3.bf16.msra.mxu0 %v5705_v13 }
 0x398   :  { %5099 = vmatprep.subr.bf16.mxu0 %v5708_v14 }
 0x399   :  { %5082 = vmatpush3.bf16.msra.mxu1 %v5707_v53 }
 0x39a   :  { %5083 = vmatprep.subr.bf16.mxu1 %v5710_v7 }
 0x39b   :  { %5100 = vmatpush3.bf16.msra.mxu0 %v5709_v38 }
 0x39c   :  { %5101 = vmatprep.subr.bf16.mxu0 %v5712_v44 }
 0x39d   :  { %5084 = vmatpush3.bf16.msra.mxu1 %v5711_v30 }
 0x39e   :  { %5085 = vmatprep.subr.bf16.mxu1 %v5714_v24 }
 0x39f   :  { %5102 = vmatpush3.bf16.msra.mxu0 %v5713_v33 }
 0x3a0   :  { %5103 = vmatprep.subr.bf16.mxu0 %v5716_v26 }
 0x3a1   :  { %5086 = vmatpush3.bf16.msra.mxu1 %v5715_v23 }
 0x3a2   :  { %5087 = vmatprep.subr.bf16.mxu1 %v5718_v22 }
 0x3a3   :  { %5104 = vmatpush3.bf16.msra.mxu0 %v5717_v63 }
 0x3a4   :  { %5105 = vmatprep.subr.bf16.mxu0 %v5720_v41 }
 0x3a5   :  { %5088 = vmatpush3.bf16.msra.mxu1 %v5719_v55 }
 0x3a6   :  { %5117 = vmatprep.subr.bf16.mxu1 %v5726_v34 }
 0x3a7   :  { %5106 = vmatpush3.bf16.msra.mxu0 %v5721_v3 }
 0x3a8   :  { %5107 = vmatprep.subr.bf16.mxu0 %v5722_v4 }
 0x3ab   :  { %5108 = vmatpush3.bf16.msra.mxu0 %v5723_v45 }
 0x3ac   :  { %5109 = vmatprep.subr.bf16.mxu0 %v5724_v0 }
 0x3af   :  { %5110 = vmatpush3.bf16.msra.mxu0 %v5725_v39 }
 0x3c3   :  { %v3138_v16 = vpop.f32.mrf.mxu0 }
 0x3c4   :  { %v3293_v37 = vpack.c.bf16 %v3138_v16, %v3138_v16 }
 0x3c5   :  { %v3140_v9 = vpop.f32.mrf.mxu0 }
 0x3c6   :  { %v3294_v28 = vpack.c.bf16 %v3140_v9, %v3140_v9 }
 0x3c8   :  { %4394 = vmatprep.mubr.bf16.mxu1 %v3294_v28 }
 0x3c9   :  { %4395 = vmatmul.mubr.bf16.vlgmr.msra.gmra.mxu1 %v3293_v37 }
 0x3ca   :  { %5118 = vmatpush3.bf16.msra.mxu1 %v5727_v29 }
 0x3cb   :  { %5119 = vmatprep.subr.bf16.mxu1 %v5728_v35 }
 0x3cd   :  { %v3209_v46 = vpop.f32.mrf.mxu0 }
 0x3ce   :  { %5120 = vmatpush3.bf16.msra.mxu1 %v5729_v40  ;;  %v3295_v25 = vpack.c.bf16 %v3209_v46, %v3209_v46 }
 0x3cf   :  { %v3211_v47 = vpop.f32.mrf.mxu0  ;;  %5121 = vmatprep.subr.bf16.mxu1 %v5730_v52 }
 0x3d0   :  { %v3296_v56 = vpack.c.bf16 %v3211_v47, %v3211_v47 }
 0x3d2   :  { %4434 = vmatprep.mubr.bf16.mxu0 %v3296_v56  ;;  %5122 = vmatpush3.bf16.msra.mxu1 %v5731_v36 }
 0x3d3   :  { %4435 = vmatmul.mubr.bf16.vlgmr.msra.gmra.mxu0 %v3295_v25  ;;  %5123 = vmatprep.subr.bf16.mxu1 %v5732_v32 }
 0x3d6   :  { %5124 = vmatpush3.bf16.msra.mxu1 %v5733_v60 }
 0x3d7   :  { %5125 = vmatprep.subr.bf16.mxu1 %v5734_v48 }
 0x3da   :  { %5126 = vmatpush3.bf16.msra.mxu1 %v5735_v31 }
 0x3db   :  { %5127 = vmatprep.subr.bf16.mxu1 %v5736_v62 }
 0x3de   :  { %5128 = vmatpush3.bf16.msra.mxu1 %v5737_v10 }
 0x3df   :  { %5129 = vmatprep.subr.bf16.mxu1 %v5738_v2 }
 0x3e2   :  { %5130 = vmatpush3.bf16.msra.mxu1 %v5739_v51 }
 0x3e3   :  { %5131 = vmatprep.subr.bf16.mxu1 %v5740_v5 }
 0x3e6   :  { %5132 = vmatpush3.bf16.msra.mxu1 %v5741_v49 }
 0x404   :  { %v3280_v11 = vpop.f32.mrf.mxu0 }
 0x405   :  { %v3297_v59 = vpack.c.bf16 %v3280_v11, %v3280_v11 }
 0x406   :  { %v3282_v43 = vpop.f32.mrf.mxu0 }
 0x407   :  { %v3298_v58 = vpack.c.bf16 %v3282_v43, %v3282_v43 }
 0x409   :  { %4474 = vmatprep.mubr.bf16.mxu1 %v3298_v58 }
 0x40a   :  { %4475 = vmatmul.mubr.bf16.vlgmr.msra.gmra.mxu1 %v3297_v59 }
 0x40b   :  { %v5001_v15 = vpop.f32.mrf.mxu1 }
 0x40d   :  { %v5002_v17 = vpop.f32.mrf.mxu1 }
 0x40e   :  { %v5003_v6 = vadd.f32 %v5002_v17, %v5001_v15 }
 0x40f   :  { %v5004_v12 = vpop.f32.mrf.mxu1 }
 0x410   :  { %v4237_v19 = vadd.f32 %v5003_v6, %v4830_v8 }
 0x411   :  { %v5005_v18 = vpop.f32.mrf.mxu1 }
 0x424   :  { %v5023_v27 = vpop.f32.mrf.mxu0 }
 0x426   :  { %v5024_v54 = vpop.f32.mrf.mxu0 }
 0x427   :  { %v5025_v42 = vadd.f32 %v5024_v54, %v5023_v27 }
 0x428   :  { %v5026_v50 = vpop.f32.mrf.mxu0 }
 0x429   :  { %v4277_v20 = vadd.f32 %v5025_v42, %v4237_v19 }
 0x42a   :  { %v5027_v21 = vpop.f32.mrf.mxu0 }
 0x448   :  { %v5045_v61 = vpop.f32.mrf.mxu1 }
 0x44a   :  { %v5046_v57 = vpop.f32.mrf.mxu1 }
 0x44b   :  { %v5047_v1 = vadd.f32 %v5046_v57, %v5045_v61 }
 0x44c   :  { %v5048_v13 = vpop.f32.mrf.mxu1 }
 0x44d   :  { %v4317_v14 = vadd.f32 %v5047_v1, %v4277_v20 }
 0x44e   :  { %v5049_v53 = vpop.f32.mrf.mxu1 }
 0x452   :  { %v5067_v7 = vpop.f32.mrf.mxu0 }
 0x454   :  { %v5068_v38 = vpop.f32.mrf.mxu0 }
 0x455   :  { %v5069_v44 = vadd.f32 %v5068_v38, %v5067_v7 }
 0x456   :  { %v5070_v30 = vpop.f32.mrf.mxu0 }
 0x457   :  { %v4357_v24 = vadd.f32 %v5069_v44, %v4317_v14 }
 0x458   :  { %v5071_v33 = vpop.f32.mrf.mxu0 }
 0x489   :  { %v5089_v26 = vpop.f32.mrf.mxu1 }
 0x48b   :  { %v5090_v23 = vpop.f32.mrf.mxu1 }
 0x48c   :  { %v5091_v4 = vadd.f32 %v5090_v23, %v5089_v26 }
 0x48d   :  { %v5092_v22 = vpop.f32.mrf.mxu1 }
 0x48e   :  { %v4397_v39 = vadd.f32 %v5091_v4, %v4357_v24 }
 0x48f   :  { %v5093_v63 = vpop.f32.mrf.mxu1 }
 0x493   :  { %v5111_v41 = vpop.f32.mrf.mxu0 }
 0x495   :  { %v5112_v55 = vpop.f32.mrf.mxu0 }
 0x496   :  { %v5113_v45 = vadd.f32 %v5112_v55, %v5111_v41 }
 0x497   :  { %v5114_v34 = vpop.f32.mrf.mxu0 }
 0x498   :  { %v4437_v37 = vadd.f32 %v5113_v45, %v4397_v39 }
 0x499   :  { %v5115_v3 = vpop.f32.mrf.mxu0 }
 0x4ca   :  { %v5133_v0 = vpop.f32.mrf.mxu1 }
 0x4cc   :  { %v5134_v16 = vpop.f32.mrf.mxu1 }
 0x4cd   :  { %v5135_v9 = vadd.f32 %v5134_v16, %v5133_v0 }
 0x4ce   :  { %v5136_v28 = vpop.f32.mrf.mxu1 }
 0x4cf   :  { %v4477_v29 = vadd.f32 %v5135_v9, %v4437_v37 }
 0x4d0   :  { %v5137_v35 = vpop.f32.mrf.mxu1 }
 0x4d1   :  { %4482 = vst [vmem:[%s6511_s9] sm:$0xff] %v4477_v29 }
 0x4d2   :  { %4487 = vsyncpa [#allocation3], 1 }
 0x4d3   :  { %4488 = vsyncpa [#allocation5], 1 }

</bundles_post_ra>
